<compile_context>
chip_gen: v7x
topology: tpu7x:2x2x1
jax: 0.10.0
libtpu: 0.0.40
codegen_flags: <defaults>
</compile_context>

<pallas_src>
import jax
import jax.numpy as jnp
from jax.experimental import pallas as pl
from jax.experimental.pallas import tpu as pltpu

EMB_DIM = 300          # fixed by nn.Parameter(torch.zeros(300))
NEG_SLOPE = 0.01       # nn.LeakyReLU default negative_slope
LANE = 128
SUBLANE = 8


def _round_up(x, m):
    return ((x + m - 1) // m) * m


def _pad_to(x, shape):
    return jnp.pad(x, [(0, t - s) for s, t in zip(x.shape, shape)])


def model_kernel(emb_ref, mask_ref, attn_ref,
                 wfc_ref, bfc_ref, wres_ref, bres_ref,
                 whead_ref, bhead_ref, out_ref):
    emb = emb_ref[...]                      # (2, TB, L, E_pad)  -- both features stacked
    mask = mask_ref[...]                    # (TB, L)            -- x[-1]
    attn = attn_ref[...]                    # (2, E_pad)

    # --- attention pooling for both features at once ---------------------------
    m = jnp.tanh(emb)
    # matmul(M, attn)  ->  VPU multiply + XLU lane reduce over E
    scores = jnp.sum(m * attn[:, None, None, :], axis=-1)          # (2, TB, L)
    scores = scores * mask[None, :, :]                              # * x[-1]
    scores = scores - jnp.max(scores, axis=-1, keepdims=True)       # stable softmax(dim=1)
    e = jnp.exp(scores)
    alpha = e / jnp.sum(e, axis=-1, keepdims=True)                  # (2, TB, L)

    pooled = jnp.sum(emb * alpha[..., None], axis=2)                # (2, TB, E_pad)
    pooled = jnp.maximum(pooled, 0.0)                               # relu

    # --- fc(concat([o1, o2])) == o1 @ Wfc[:E] + o2 @ Wfc[E:]  (no in-kernel concat)
    h = (jnp.dot(pooled[0], wfc_ref[0], preferred_element_type=jnp.float32)
         + jnp.dot(pooled[1], wfc_ref[1], preferred_element_type=jnp.float32)
         + bfc_ref[...])
    h = jnp.maximum(h, 0.0)                                         # relu

    # --- out = out + LeakyReLU(Linear(out)), three times ------------------------
    bres = bres_ref[...]                                            # (3, H_pad)
    for r in range(3):
        z = (jnp.dot(h, wres_ref[r], preferred_element_type=jnp.float32)
             + bres[r:r + 1, :])
        h = h + jnp.where(z > 0, z, NEG_SLOPE * z)

    # --- fused age|gender head: one MXU dot, one lane-dense (TB, 128) store -----
    out_ref[...] = (jnp.dot(h, whead_ref[...], preferred_element_type=jnp.float32)
                    + bhead_ref[...])


def two_feature_attention_forward(emb1, emb2, mask, params, block_b=256):
    """emb1/emb2: (B, L, E) f32 already-embedded features; mask: (B, L) f32 (= x[-1])."""
    B, L, E = emb1.shape
    H = params["w_fc1"].shape[1]
    A = params["w_age"].shape[1]
    G = params["w_gender"].shape[1]
    f32 = jnp.float32

    e_pad = _round_up(E, LANE)              # 300 -> 384
    h_pad = _round_up(H, LANE)              # 64  -> 128
    o_pad = _round_up(A + G, LANE)          # 8   -> 128

    tb = min(block_b, _round_up(B, SUBLANE))
    b_pad = _round_up(B, tb)

    # Stack + zero-pad the two embedded feature streams: (2, B_pad, L, E_pad).
    emb = jnp.stack([emb1, emb2], axis=0).astype(f32)
    emb = _pad_to(emb, (2, b_pad, L, e_pad))
    mask_p = _pad_to(mask.astype(f32), (b_pad, L))

    # Stacked / padded parameters (zero padding keeps the math exact).
    attn = _pad_to(jnp.stack([params["attn1"][0], params["attn2"][0]], 0).astype(f32),
                   (2, e_pad))
    w_fc = jnp.stack([_pad_to(params["w_fc1"].astype(f32), (e_pad, h_pad)),
                      _pad_to(params["w_fc2"].astype(f32), (e_pad, h_pad))], axis=0)
    b_fc = _pad_to(params["b_fc"].astype(f32), (1, h_pad))
    w_res = jnp.stack([_pad_to(params[k].astype(f32), (h_pad, h_pad))
                       for k in ("w1", "w2", "w3")], axis=0)
    b_res = jnp.stack([_pad_to(params[k].astype(f32)[0], (h_pad,))
                       for k in ("b1", "b2", "b3")], axis=0)
    w_head = _pad_to(jnp.concatenate([params["w_age"], params["w_gender"]], 1).astype(f32),
                     (h_pad, o_pad))
    b_head = _pad_to(jnp.concatenate([params["b_age"], params["b_gender"]], 1).astype(f32),
                     (1, o_pad))

    grid = (b_pad // tb,)

    out = pl.pallas_call(
        model_kernel,
        out_shape=jax.ShapeDtypeStruct((b_pad, o_pad), f32),
        grid=grid,
        in_specs=[
            # streamed on the batch axis
            pl.BlockSpec((2, tb, L, e_pad), lambda i: (0, i, 0, 0)),
            pl.BlockSpec((tb, L), lambda i: (i, 0)),
            # VMEM-resident parameters (constant index_map)
            pl.BlockSpec((2, e_pad), lambda i: (0, 0)),
            pl.BlockSpec((2, e_pad, h_pad), lambda i: (0, 0, 0)),
            pl.BlockSpec((1, h_pad), lambda i: (0, 0)),
            pl.BlockSpec((3, h_pad, h_pad), lambda i: (0, 0, 0)),
            pl.BlockSpec((3, h_pad), lambda i: (0, 0)),
            pl.BlockSpec((h_pad, o_pad), lambda i: (0, 0)),
            pl.BlockSpec((1, o_pad), lambda i: (0, 0)),
        ],
        out_specs=pl.BlockSpec((tb, o_pad), lambda i: (i, 0)),
        compiler_params=pltpu.CompilerParams(
            dimension_semantics=("parallel",)),
    )(emb, mask_p, attn, w_fc, b_fc, w_res, b_res, w_head, b_head)

    return out[:B, :A], out[:B, A:A + G]


def reference_forward(emb1, emb2, mask, params):
    """Pure-JAX mirror of the PyTorch forward for validation."""
    def pool(emb, a):
        m = jnp.tanh(emb)
        scores = jnp.einsum("ble,e->bl", m, a[0]) * mask
        alpha = jax.nn.softmax(scores, axis=1)[..., None]
        return jax.nn.relu(jnp.sum(emb * alpha, axis=1))

    o = jnp.concatenate([pool(emb1, params["attn1"]), pool(emb2, params["attn2"])], axis=1)
    w_fc = jnp.concatenate([params["w_fc1"], params["w_fc2"]], axis=0)
    h = jax.nn.relu(o @ w_fc + params["b_fc"][0])
    for w, b in ((params["w1"], params["b1"]),
                 (params["w2"], params["b2"]),
                 (params["w3"], params["b3"])):
        h = h + jax.nn.leaky_relu(h @ w + b[0], NEG_SLOPE)
    return h @ params["w_age"] + params["b_age"][0], h @ params["w_gender"] + params["b_gender"][0]


if __name__ == "__main__":
    # Small shapes consistent with the module:
    B, L = 2, 8                 # batch, sequence length
    V = 50                      # vocab size per feature
    HIDDEN = 32                 # hidden_size per feature -> fc_input_size = 2 * 32
    FC_IN = 2 * HIDDEN
    NUM_AGE, NUM_GENDER = 6, 2

    key = jax.random.PRNGKey(0)
    keys = jax.random.split(key, 20)

    # Embedding tables (nn.Embedding.from_pretrained) — deterministic synthetic weights.
    emb_table1 = jax.random.normal(keys[0], (V, EMB_DIM), jnp.float32) * 0.1
    emb_table2 = jax.random.normal(keys[1], (V, EMB_DIM), jnp.float32) * 0.1

    # Inputs: x[0], x[1] are index sequences; x[-1] is the (B, L) float multiplier.
    x0 = jax.random.randint(keys[2], (B, L), 0, V, dtype=jnp.int32)
    x1 = jax.random.randint(keys[3], (B, L), 0, V, dtype=jnp.int32)
    x_last = jax.random.uniform(keys[4], (B, L), jnp.float32)

    # Parameters (attention vectors are zeros in __init__; use small nonzero values
    # so the softmax path is exercised — this is a synthetic kernel, not a checkpoint).
    params = {
        "attn1": (jax.random.normal(keys[5], (1, EMB_DIM), jnp.float32) * 0.1),
        "attn2": (jax.random.normal(keys[6], (1, EMB_DIM), jnp.float32) * 0.1),
        "w_fc1": jax.random.normal(keys[7], (EMB_DIM, FC_IN), jnp.float32) * 0.05,
        "w_fc2": jax.random.normal(keys[8], (EMB_DIM, FC_IN), jnp.float32) * 0.05,
        "b_fc":  jax.random.normal(keys[9], (1, FC_IN), jnp.float32) * 0.05,
        "w1": jax.random.normal(keys[10], (FC_IN, FC_IN), jnp.float32) * 0.05,
        "b1": jax.random.normal(keys[11], (1, FC_IN), jnp.float32) * 0.05,
        "w2": jax.random.normal(keys[12], (FC_IN, FC_IN), jnp.float32) * 0.05,
        "b2": jax.random.normal(keys[13], (1, FC_IN), jnp.float32) * 0.05,
        "w3": jax.random.normal(keys[14], (FC_IN, FC_IN), jnp.float32) * 0.05,
        "b3": jax.random.normal(keys[15], (1, FC_IN), jnp.float32) * 0.05,
        "w_age": jax.random.normal(keys[16], (FC_IN, NUM_AGE), jnp.float32) * 0.05,
        "b_age": jax.random.normal(keys[17], (1, NUM_AGE), jnp.float32) * 0.05,
        "w_gender": jax.random.normal(keys[18], (FC_IN, NUM_GENDER), jnp.float32) * 0.05,
        "b_gender": jax.random.normal(keys[19], (1, NUM_GENDER), jnp.float32) * 0.05,
    }

    # Embedding lookup (gather) stays in plain JAX glue.
    emb1 = emb_table1[x0]       # (B, L, 300)
    emb2 = emb_table2[x1]       # (B, L, 300)

    out_age, out_gender = two_feature_attention_forward(emb1, emb2, x_last, params)
    jax.block_until_ready((out_age, out_gender))

    ref_age, ref_gender = reference_forward(emb1, emb2, x_last, params)
    assert out_age.shape == (B, NUM_AGE) and out_gender.shape == (B, NUM_GENDER)
    assert jnp.allclose(out_age, ref_age, atol=1e-4, rtol=1e-4)
    assert jnp.allclose(out_gender, ref_gender, atol=1e-4, rtol=1e-4)

    print("KERNEL_OK")
</pallas_src>

<mosaic_0001>
module attributes {stable_mosaic.version = 11 : i64} {
  func.func @model_kernel(%arg0: i32, %arg1: memref<2x8x8x384xf32, #tpu.memory_space<vmem>>, %arg2: memref<8x8xf32, #tpu.memory_space<vmem>>, %arg3: memref<2x384xf32, #tpu.memory_space<vmem>>, %arg4: memref<2x384x128xf32, #tpu.memory_space<vmem>>, %arg5: memref<1x128xf32, #tpu.memory_space<vmem>>, %arg6: memref<3x128x128xf32, #tpu.memory_space<vmem>>, %arg7: memref<3x128xf32, #tpu.memory_space<vmem>>, %arg8: memref<128x128xf32, #tpu.memory_space<vmem>>, %arg9: memref<1x128xf32, #tpu.memory_space<vmem>>, %arg10: memref<8x128xf32, #tpu.memory_space<vmem>>) attributes {dimension_semantics = [#tpu.dimension_semantics<parallel>], iteration_bounds = array<i64: 1>, scalar_prefetch = 0 : i64, scratch_operands = 0 : i64, tpu.core_type = #tpu.core_type<tc>, window_params = [{transform_indices = @transform_0, window_bounds = array<i64: 2, 8, 8, 384>}, {transform_indices = @transform_1, window_bounds = array<i64: 8, 8>}, {pipeline_mode = #tpu.pipeline_mode<synchronous>, transform_indices = @transform_2, window_bounds = array<i64: 2, 384>}, {pipeline_mode = #tpu.pipeline_mode<synchronous>, transform_indices = @transform_3, window_bounds = array<i64: 2, 384, 128>}, {pipeline_mode = #tpu.pipeline_mode<synchronous>, transform_indices = @transform_4, window_bounds = array<i64: 1, 128>}, {pipeline_mode = #tpu.pipeline_mode<synchronous>, transform_indices = @transform_5, window_bounds = array<i64: 3, 128, 128>}, {pipeline_mode = #tpu.pipeline_mode<synchronous>, transform_indices = @transform_6, window_bounds = array<i64: 3, 128>}, {pipeline_mode = #tpu.pipeline_mode<synchronous>, transform_indices = @transform_7, window_bounds = array<i64: 128, 128>}, {pipeline_mode = #tpu.pipeline_mode<synchronous>, transform_indices = @transform_8, window_bounds = array<i64: 1, 128>}, {transform_indices = @transform_9, window_bounds = array<i64: 8, 128>}]} {
    %c0 = arith.constant 0 : index
    %c0_0 = arith.constant 0 : index
    %c0_1 = arith.constant 0 : index
    %c0_2 = arith.constant 0 : index
    %0 = vector.load %arg1[%c0, %c0_0, %c0_1, %c0_2] : memref<2x8x8x384xf32, #tpu.memory_space<vmem>>, vector<2x8x8x384xf32>
    %c0_3 = arith.constant 0 : index
    %c0_4 = arith.constant 0 : index
    %1 = vector.load %arg2[%c0_3, %c0_4] : memref<8x8xf32, #tpu.memory_space<vmem>>, vector<8x8xf32>
    %c0_5 = arith.constant 0 : index
    %c0_6 = arith.constant 0 : index
    %2 = vector.load %arg3[%c0_5, %c0_6] : memref<2x384xf32, #tpu.memory_space<vmem>>, vector<2x384xf32>
    %3 = math.tanh %0 : vector<2x8x8x384xf32>
    %4 = vector.shape_cast %2 : vector<2x384xf32> to vector<2x1x1x384xf32>
    %5 = vector.broadcast %4 : vector<2x1x1x384xf32> to vector<2x8x8x384xf32>
    %6 = arith.mulf %3, %5 : vector<2x8x8x384xf32>
    %cst = arith.constant dense<0.000000e+00> : vector<2x8x8xf32>
    %7 = vector.multi_reduction <add>, %6, %cst [3] : vector<2x8x8x384xf32> to vector<2x8x8xf32>
    %8 = vector.shape_cast %1 : vector<8x8xf32> to vector<1x8x8xf32>
    %9 = vector.broadcast %8 : vector<1x8x8xf32> to vector<2x8x8xf32>
    %10 = arith.mulf %7, %9 : vector<2x8x8xf32>
    %cst_7 = arith.constant dense<0xFF800000> : vector<2x8xf32>
    %11 = vector.multi_reduction <maximumf>, %10, %cst_7 [2] : vector<2x8x8xf32> to vector<2x8xf32>
    %12 = vector.shape_cast %11 : vector<2x8xf32> to vector<2x8x1xf32>
    %13 = vector.broadcast %12 : vector<2x8x1xf32> to vector<2x8x8xf32>
    %14 = arith.subf %10, %13 : vector<2x8x8xf32>
    %15 = math.exp %14 : vector<2x8x8xf32>
    %cst_8 = arith.constant dense<0.000000e+00> : vector<2x8xf32>
    %16 = vector.multi_reduction <add>, %15, %cst_8 [2] : vector<2x8x8xf32> to vector<2x8xf32>
    %17 = vector.shape_cast %16 : vector<2x8xf32> to vector<2x8x1xf32>
    %18 = vector.broadcast %17 : vector<2x8x1xf32> to vector<2x8x8xf32>
    %19 = arith.divf %15, %18 : vector<2x8x8xf32>
    %20 = vector.shape_cast %19 : vector<2x8x8xf32> to vector<2x8x8x1xf32>
    %21 = vector.broadcast %20 : vector<2x8x8x1xf32> to vector<2x8x8x384xf32>
    %22 = arith.mulf %0, %21 : vector<2x8x8x384xf32>
    %cst_9 = arith.constant dense<0.000000e+00> : vector<2x8x384xf32>
    %23 = vector.multi_reduction <add>, %22, %cst_9 [2] : vector<2x8x8x384xf32> to vector<2x8x384xf32>
    %cst_10 = arith.constant 0.000000e+00 : f32
    %24 = vector.broadcast %cst_10 : f32 to vector<2x8x384xf32>
    %25 = arith.maximumf %23, %24 : vector<2x8x384xf32>
    %26 = vector.extract_strided_slice %25 {offsets = [0, 0, 0], sizes = [1, 8, 384], strides = [1, 1, 1]} : vector<2x8x384xf32> to vector<1x8x384xf32>
    %27 = vector.shape_cast %26 : vector<1x8x384xf32> to vector<8x384xf32>
    %c0_11 = arith.constant 0 : index
    %c0_12 = arith.constant 0 : index
    %c0_13 = arith.constant 0 : index
    %28 = vector.load %arg4[%c0_11, %c0_12, %c0_13] : memref<2x384x128xf32, #tpu.memory_space<vmem>>, vector<1x384x128xf32>
    %29 = vector.shape_cast %28 : vector<1x384x128xf32> to vector<384x128xf32>
    %cst_14 = arith.constant dense<0.000000e+00> : vector<8x128xf32>
    %30 = tpu.matmul %27, %29, %cst_14 {dimension_numbers = #tpu.dot_dimension_numbers<[1], [0], [0], [1], [0, 0, 1, 1], [], []>} : vector<8x384xf32>, vector<384x128xf32>, vector<8x128xf32> -> vector<8x128xf32>
    %31 = vector.extract_strided_slice %25 {offsets = [1, 0, 0], sizes = [1, 8, 384], strides = [1, 1, 1]} : vector<2x8x384xf32> to vector<1x8x384xf32>
    %32 = vector.shape_cast %31 : vector<1x8x384xf32> to vector<8x384xf32>
    %c1 = arith.constant 1 : index
    %c0_15 = arith.constant 0 : index
    %c0_16 = arith.constant 0 : index
    %33 = vector.load %arg4[%c1, %c0_15, %c0_16] : memref<2x384x128xf32, #tpu.memory_space<vmem>>, vector<1x384x128xf32>
    %34 = vector.shape_cast %33 : vector<1x384x128xf32> to vector<384x128xf32>
    %cst_17 = arith.constant dense<0.000000e+00> : vector<8x128xf32>
    %35 = tpu.matmul %32, %34, %cst_17 {dimension_numbers = #tpu.dot_dimension_numbers<[1], [0], [0], [1], [0, 0, 1, 1], [], []>} : vector<8x384xf32>, vector<384x128xf32>, vector<8x128xf32> -> vector<8x128xf32>
    %36 = arith.addf %30, %35 : vector<8x128xf32>
    %c0_18 = arith.constant 0 : index
    %c0_19 = arith.constant 0 : index
    %37 = vector.load %arg5[%c0_18, %c0_19] : memref<1x128xf32, #tpu.memory_space<vmem>>, vector<1x128xf32>
    %38 = vector.broadcast %37 : vector<1x128xf32> to vector<8x128xf32>
    %39 = arith.addf %36, %38 : vector<8x128xf32>
    %cst_20 = arith.constant 0.000000e+00 : f32
    %40 = vector.broadcast %cst_20 : f32 to vector<8x128xf32>
    %41 = arith.maximumf %39, %40 : vector<8x128xf32>
    %c0_21 = arith.constant 0 : index
    %c0_22 = arith.constant 0 : index
    %42 = vector.load %arg7[%c0_21, %c0_22] : memref<3x128xf32, #tpu.memory_space<vmem>>, vector<3x128xf32>
    %c0_23 = arith.constant 0 : index
    %c0_24 = arith.constant 0 : index
    %c0_25 = arith.constant 0 : index
    %43 = vector.load %arg6[%c0_23, %c0_24, %c0_25] : memref<3x128x128xf32, #tpu.memory_space<vmem>>, vector<1x128x128xf32>
    %44 = vector.shape_cast %43 : vector<1x128x128xf32> to vector<128x128xf32>
    %cst_26 = arith.constant dense<0.000000e+00> : vector<8x128xf32>
    %45 = tpu.matmul %41, %44, %cst_26 {dimension_numbers = #tpu.dot_dimension_numbers<[1], [0], [0], [1], [0, 0, 1, 1], [], []>} : vector<8x128xf32>, vector<128x128xf32>, vector<8x128xf32> -> vector<8x128xf32>
    %46 = vector.extract_strided_slice %42 {offsets = [0, 0], sizes = [1, 128], strides = [1, 1]} : vector<3x128xf32> to vector<1x128xf32>
    %47 = vector.broadcast %46 : vector<1x128xf32> to vector<8x128xf32>
    %48 = arith.addf %45, %47 : vector<8x128xf32>
    %cst_27 = arith.constant 0.000000e+00 : f32
    %49 = vector.broadcast %cst_27 : f32 to vector<8x128xf32>
    %50 = arith.cmpf ogt, %48, %49 : vector<8x128xf32>
    %cst_28 = arith.constant 0.00999999977 : f32
    %51 = vector.broadcast %cst_28 : f32 to vector<8x128xf32>
    %52 = arith.mulf %51, %48 : vector<8x128xf32>
    %53 = arith.select %50, %48, %52 : vector<8x128xi1>, vector<8x128xf32>
    %54 = arith.addf %41, %53 : vector<8x128xf32>
    %c1_29 = arith.constant 1 : index
    %c0_30 = arith.constant 0 : index
    %c0_31 = arith.constant 0 : index
    %55 = vector.load %arg6[%c1_29, %c0_30, %c0_31] : memref<3x128x128xf32, #tpu.memory_space<vmem>>, vector<1x128x128xf32>
    %56 = vector.shape_cast %55 : vector<1x128x128xf32> to vector<128x128xf32>
    %cst_32 = arith.constant dense<0.000000e+00> : vector<8x128xf32>
    %57 = tpu.matmul %54, %56, %cst_32 {dimension_numbers = #tpu.dot_dimension_numbers<[1], [0], [0], [1], [0, 0, 1, 1], [], []>} : vector<8x128xf32>, vector<128x128xf32>, vector<8x128xf32> -> vector<8x128xf32>
    %58 = vector.extract_strided_slice %42 {offsets = [1, 0], sizes = [1, 128], strides = [1, 1]} : vector<3x128xf32> to vector<1x128xf32>
    %59 = vector.broadcast %58 : vector<1x128xf32> to vector<8x128xf32>
    %60 = arith.addf %57, %59 : vector<8x128xf32>
    %cst_33 = arith.constant 0.000000e+00 : f32
    %61 = vector.broadcast %cst_33 : f32 to vector<8x128xf32>
    %62 = arith.cmpf ogt, %60, %61 : vector<8x128xf32>
    %cst_34 = arith.constant 0.00999999977 : f32
    %63 = vector.broadcast %cst_34 : f32 to vector<8x128xf32>
    %64 = arith.mulf %63, %60 : vector<8x128xf32>
    %65 = arith.select %62, %60, %64 : vector<8x128xi1>, vector<8x128xf32>
    %66 = arith.addf %54, %65 : vector<8x128xf32>
    %c2 = arith.constant 2 : index
    %c0_35 = arith.constant 0 : index
    %c0_36 = arith.constant 0 : index
    %67 = vector.load %arg6[%c2, %c0_35, %c0_36] : memref<3x128x128xf32, #tpu.memory_space<vmem>>, vector<1x128x128xf32>
    %68 = vector.shape_cast %67 : vector<1x128x128xf32> to vector<128x128xf32>
    %cst_37 = arith.constant dense<0.000000e+00> : vector<8x128xf32>
    %69 = tpu.matmul %66, %68, %cst_37 {dimension_numbers = #tpu.dot_dimension_numbers<[1], [0], [0], [1], [0, 0, 1, 1], [], []>} : vector<8x128xf32>, vector<128x128xf32>, vector<8x128xf32> -> vector<8x128xf32>
    %70 = vector.extract_strided_slice %42 {offsets = [2, 0], sizes = [1, 128], strides = [1, 1]} : vector<3x128xf32> to vector<1x128xf32>
    %71 = vector.broadcast %70 : vector<1x128xf32> to vector<8x128xf32>
    %72 = arith.addf %69, %71 : vector<8x128xf32>
    %cst_38 = arith.constant 0.000000e+00 : f32
    %73 = vector.broadcast %cst_38 : f32 to vector<8x128xf32>
    %74 = arith.cmpf ogt, %72, %73 : vector<8x128xf32>
    %cst_39 = arith.constant 0.00999999977 : f32
    %75 = vector.broadcast %cst_39 : f32 to vector<8x128xf32>
    %76 = arith.mulf %75, %72 : vector<8x128xf32>
    %77 = arith.select %74, %72, %76 : vector<8x128xi1>, vector<8x128xf32>
    %78 = arith.addf %66, %77 : vector<8x128xf32>
    %c0_40 = arith.constant 0 : index
    %c0_41 = arith.constant 0 : index
    %79 = vector.load %arg8[%c0_40, %c0_41] : memref<128x128xf32, #tpu.memory_space<vmem>>, vector<128x128xf32>
    %cst_42 = arith.constant dense<0.000000e+00> : vector<8x128xf32>
    %80 = tpu.matmul %78, %79, %cst_42 {dimension_numbers = #tpu.dot_dimension_numbers<[1], [0], [0], [1], [0, 0, 1, 1], [], []>} : vector<8x128xf32>, vector<128x128xf32>, vector<8x128xf32> -> vector<8x128xf32>
    %c0_43 = arith.constant 0 : index
    %c0_44 = arith.constant 0 : index
    %81 = vector.load %arg9[%c0_43, %c0_44] : memref<1x128xf32, #tpu.memory_space<vmem>>, vector<1x128xf32>
    %82 = vector.broadcast %81 : vector<1x128xf32> to vector<8x128xf32>
    %83 = arith.addf %80, %82 : vector<8x128xf32>
    %c0_45 = arith.constant 0 : index
    %c0_46 = arith.constant 0 : index
    %84 = vector.load %arg10[%c0_45, %c0_46] : memref<8x128xf32, #tpu.memory_space<vmem>>, vector<8x128xf32>
    tpu.vector_store %arg10[%c0_45, %c0_46], %83 {strides = array<i32>} : memref<8x128xf32, #tpu.memory_space<vmem>>, vector<8x128xf32>,
    return
  }
  func.func @transform_0(%arg0: i32) -> (i32, i32, i32, i32) {
    %c0_i32 = arith.constant 0 : i32
    %c0_i32_0 = arith.constant 0 : i32
    %c0_i32_1 = arith.constant 0 : i32
    %c0_i32_2 = arith.constant 0 : i32
    return %c0_i32, %arg0, %c0_i32_0, %c0_i32_1 : i32, i32, i32, i32
  }
  func.func @transform_1(%arg0: i32) -> (i32, i32) {
    %c0_i32 = arith.constant 0 : i32
    %c0_i32_0 = arith.constant 0 : i32
    return %arg0, %c0_i32 : i32, i32
  }
  func.func @transform_2(%arg0: i32) -> (i32, i32) {
    %c0_i32 = arith.constant 0 : i32
    %c0_i32_0 = arith.constant 0 : i32
    %c0_i32_1 = arith.constant 0 : i32
    return %c0_i32, %c0_i32_0 : i32, i32
  }
  func.func @transform_3(%arg0: i32) -> (i32, i32, i32) {
    %c0_i32 = arith.constant 0 : i32
    %c0_i32_0 = arith.constant 0 : i32
    %c0_i32_1 = arith.constant 0 : i32
    %c0_i32_2 = arith.constant 0 : i32
    return %c0_i32, %c0_i32_0, %c0_i32_1 : i32, i32, i32
  }
  func.func @transform_4(%arg0: i32) -> (i32, i32) {
    %c0_i32 = arith.constant 0 : i32
    %c0_i32_0 = arith.constant 0 : i32
    %c0_i32_1 = arith.constant 0 : i32
    return %c0_i32, %c0_i32_0 : i32, i32
  }
  func.func @transform_5(%arg0: i32) -> (i32, i32, i32) {
    %c0_i32 = arith.constant 0 : i32
    %c0_i32_0 = arith.constant 0 : i32
    %c0_i32_1 = arith.constant 0 : i32
    %c0_i32_2 = arith.constant 0 : i32
    return %c0_i32, %c0_i32_0, %c0_i32_1 : i32, i32, i32
  }
  func.func @transform_6(%arg0: i32) -> (i32, i32) {
    %c0_i32 = arith.constant 0 : i32
    %c0_i32_0 = arith.constant 0 : i32
    %c0_i32_1 = arith.constant 0 : i32
    return %c0_i32, %c0_i32_0 : i32, i32
  }
  func.func @transform_7(%arg0: i32) -> (i32, i32) {
    %c0_i32 = arith.constant 0 : i32
    %c0_i32_0 = arith.constant 0 : i32
    %c0_i32_1 = arith.constant 0 : i32
    return %c0_i32, %c0_i32_0 : i32, i32
  }
  func.func @transform_8(%arg0: i32) -> (i32, i32) {
    %c0_i32 = arith.constant 0 : i32
    %c0_i32_0 = arith.constant 0 : i32
    %c0_i32_1 = arith.constant 0 : i32
    return %c0_i32, %c0_i32_0 : i32, i32
  }
  func.func @transform_9(%arg0: i32) -> (i32, i32) {
    %c0_i32 = arith.constant 0 : i32
    %c0_i32_0 = arith.constant 0 : i32
    return %arg0, %c0_i32 : i32, i32
  }
}

</mosaic_0001>

<bundles_post_ra>
// kernel: tpu_custom_call.1
= control target key start
LH: loop header
LB: loop body
LE: loop exit
PB: predicated region body
PF: predicated region fallthrough
CT: control target
= control target key end

     0   :  { %14 = vsyncpa [#allocation3], 0  ;;  %s4213_s0 = inlined_call_operand.hbm [shape: f32[2,8,8,384], index: 0, kind: input, shape index: {}]   ;;  %s4214_s1 = inlined_call_operand.hbm [shape: f32[8,8], index: 1, kind: input, shape index: {}]   ;;  %s4215_s2 = inlined_call_operand.vmem [shape: f32[2,384], index: 2, kind: input, shape index: {}]   ;;  %s4216_s3 = inlined_call_operand.hbm [shape: f32[2,384,128], index: 3, kind: input, shape index: {}]   ;;  %s4217_s4 = inlined_call_operand.vmem [shape: f32[1,128], index: 4, kind: input, shape index: {}]   ;;  %s4218_s5 = inlined_call_operand.hbm [shape: f32[3,128,128], index: 5, kind: input, shape index: {}]   ;;  %s4219_s6 = inlined_call_operand.vmem [shape: f32[3,128], index: 6, kind: input, shape index: {}]   ;;  %s4220_s7 = inlined_call_operand.hbm [shape: f32[128,128], index: 7, kind: input, shape index: {}]   ;;  %s4221_s8 = inlined_call_operand.vmem [shape: f32[1,128], index: 8, kind: input, shape index: {}]   ;;  %s4222_s9 = inlined_call_operand.hbm [shape: f32[8,128], index: 9, kind: output, shape index: {}]  }
   0x1   :  { %15 = vsyncpa [#allocation6], 0 }
   0x2   :  { %16 = vsyncpa [#allocation9], 0 }
   0x3   :  { %17 = vsyncpa [#allocation4], 0  ;;  %s3282_s30 = smov [#allocation5]   ;;  %s3142_s13 = scalar_lea.hbm %s4214_s1, 128 }
   0x4   :  { %s36_s10 = sshll.u32 %s3282_s30, 4  ;;  %p3143_p0 = scmp.ne.s32.totalorder %s4214_s1, %s3142_s13  ;;  %s37_s10 = int_to_ptr.vmem [resolvable:$true] %s36_s10 }
   0x5   :  { %p3146_p1 = scmp.lt.u32.totalorder %s3142_s13, %s4214_s1 }
   0x7   :  { %p3148_p2 = pnand %p3146_p1, %p3143_p0 }
   0x9   :  { %3151 = shalt.err (!%p3148_p2)
}
   0xa   :  { %s3152_s18 = scalar_lea.vmem %s37_s10, 128  ;;  %p3157_p4 = scmp.lt.s32.totalorder %s37_s10, %s37_s10 }
   0xb   :  { %p3153_p3 = scmp.ne.s32.totalorder %s37_s10, %s3152_s18  ;;  %p3158_p5 = scmp.lt.s32.totalorder %s3152_s18, %s3152_s18 }
   0xd   :  { %p3159_p6 = por %p3158_p5, %p3157_p4 }
   0xf   :  { %p3160_p7 = pnand %p3159_p6, %p3153_p3 }
  0x11   :  { %3163 = shalt.err (!%p3160_p7)
}
  0x12   :  { %39 = dma.hbm_to_vmem [thread:$0]  %s4214_s1, 128, %s37_s10, [#allocation6]  }
  0x13   :  { %s3283_s21 = smov [#allocation8]   ;;  %s3284_s23 = smov [#allocation2]  }
  0x14   :  { %s61_s22 = sshll.u32 %s3283_s21, 4  ;;  %s23_s24 = sshll.u32 %s3284_s23, 4  ;;  %s62_s22 = int_to_ptr.vmem [resolvable:$true] %s61_s22  ;;  %s24_s24 = int_to_ptr.vmem [resolvable:$true] %s23_s24 }
  0x15   :  { %s3164_s27 = scalar_lea.hbm %s4218_s5, 6144 }
  0x16   :  { %p3165_p8 = scmp.ne.s32.totalorder %s4218_s5, %s3164_s27  ;;  %p3168_p9 = scmp.lt.u32.totalorder %s3164_s27, %s4218_s5 }
  0x18   :  { %p3170_p10 = pnand %p3168_p9, %p3165_p8 }
  0x1a   :  { %3173 = shalt.err (!%p3170_p10)
}
  0x1b   :  { %s3174_s1 = scalar_lea.vmem %s62_s22, 6144  ;;  %p3179_p12 = scmp.lt.s32.totalorder %s62_s22, %s62_s22 }
  0x1c   :  { %p3175_p11 = scmp.ne.s32.totalorder %s62_s22, %s3174_s1  ;;  %p3180_p13 = scmp.lt.s32.totalorder %s3174_s1, %s3174_s1 }
  0x1e   :  { %p3181_p0 = por %p3180_p13, %p3179_p12 }
  0x20   :  { %p3182_p1 = pnand %p3181_p0, %p3175_p11 }
  0x22   :  { %3185 = shalt.err (!%p3182_p1)
}
  0x23   :  { %s3285_s10 = smov 128   ;;  %s3286_s12 = smov 8  }
  0x24   :  { %67 = dma.hbm_to_vmem [thread:$0]  %s4218_s5, 6144, %s62_s22, [#allocation9], %s3285_s10, %s3285_s10, %s3286_s12  }
  0x25   :  { %s3186_s17 = scalar_lea.hbm %s4213_s0, 6144 }
  0x26   :  { %p3187_p2 = scmp.ne.s32.totalorder %s4213_s0, %s3186_s17  ;;  %p3190_p3 = scmp.lt.u32.totalorder %s3186_s17, %s4213_s0 }
  0x28   :  { %p3192_p4 = pnand %p3190_p3, %p3187_p2 }
  0x2a   :  { %3195 = shalt.err (!%p3192_p4)
}
  0x2b   :  { %s3196_s23 = scalar_lea.vmem %s24_s24, 6144  ;;  %p3201_p6 = scmp.lt.s32.totalorder %s24_s24, %s24_s24 }
  0x2c   :  { %p3197_p5 = scmp.ne.s32.totalorder %s24_s24, %s3196_s23  ;;  %p3202_p7 = scmp.lt.s32.totalorder %s3196_s23, %s3196_s23 }
  0x2e   :  { %p3203_p8 = por %p3202_p7, %p3201_p6 }
  0x30   :  { %p3204_p9 = pnand %p3203_p8, %p3197_p5 }
  0x32   :  { %3207 = shalt.err (!%p3204_p9)
}
  0x33   :  { %s3287_s5 = smov 384   ;;  %s3288_s22 = smov 24  }
  0x34   :  { %29 = dma.hbm_to_vmem [thread:$0]  %s4213_s0, 6144, %s24_s24, [#allocation3], %s3287_s5, %s3287_s5, %s3288_s22  }
  0x35   :  { %s3289_s27 = smov [#allocation7]   ;;  %s3290_s29 = smov [#allocation10]  }
  0x36   :  { %s47_s28 = sshll.u32 %s3289_s27, 4  ;;  %s75_s30 = sshll.u32 %s3290_s29, 4  ;;  %s48_s28 = int_to_ptr.vmem [resolvable:$true] %s47_s28  ;;  %s76_s30 = int_to_ptr.vmem [resolvable:$true] %s75_s30 }
  0x37   :  { %s3208_s13 = scalar_lea.hbm %s4216_s3, 12288 }
  0x38   :  { %p3209_p10 = scmp.ne.s32.totalorder %s4216_s3, %s3208_s13  ;;  %p3212_p11 = scmp.lt.u32.totalorder %s3208_s13, %s4216_s3 }
  0x3a   :  { %p3214_p12 = pnand %p3212_p11, %p3209_p10 }
  0x3c   :  { %3217 = shalt.err (!%p3214_p12)
}
  0x3d   :  { %s3218_s0 = scalar_lea.vmem %s48_s28, 12288  ;;  %p3223_p0 = scmp.lt.s32.totalorder %s48_s28, %s48_s28 }
  0x3e   :  { %p3219_p13 = scmp.ne.s32.totalorder %s48_s28, %s3218_s0  ;;  %p3224_p1 = scmp.lt.s32.totalorder %s3218_s0, %s3218_s0 }
  0x40   :  { %p3225_p2 = por %p3224_p1, %p3223_p0 }
  0x42   :  { %p3226_p3 = pnand %p3225_p2, %p3219_p13 }
  0x44   :  { %3229 = shalt.err (!%p3226_p3)
}
  0x45   :  { %53 = dma.hbm_to_vmem [thread:$0]  %s4216_s3, 12288, %s48_s28, [#allocation6], %s3285_s10, %s3285_s10, %s3286_s12  }
  0x46   :  { %s3230_s21 = scalar_lea.hbm %s4220_s7, 2048 }
  0x47   :  { %p3231_p4 = scmp.ne.s32.totalorder %s4220_s7, %s3230_s21  ;;  %p3234_p5 = scmp.lt.u32.totalorder %s3230_s21, %s4220_s7 }
  0x49   :  { %p3236_p6 = pnand %p3234_p5, %p3231_p4 }
  0x4b   :  { %3239 = shalt.err (!%p3236_p6)
}
  0x4c   :  { %s3240_s26 = scalar_lea.vmem %s76_s30, 2048  ;;  %p3245_p8 = scmp.lt.s32.totalorder %s76_s30, %s76_s30 }
  0x4d   :  { %p3241_p7 = scmp.ne.s32.totalorder %s76_s30, %s3240_s26  ;;  %p3246_p9 = scmp.lt.s32.totalorder %s3240_s26, %s3240_s26 }
  0x4f   :  { %p3247_p10 = por %p3246_p9, %p3245_p8 }
  0x51   :  { %p3248_p11 = pnand %p3247_p10, %p3241_p7 }
  0x53   :  { %3251 = shalt.err (!%p3248_p11)
}
  0x54   :  { %81 = dma.hbm_to_vmem [thread:$0]  %s4220_s7, 2048, %s76_s30, [#allocation9], %s3285_s10, %s3285_s10, %s3286_s12  }
  0x55   :  { %3274 = dma.done.wait [#allocation3], 6144  }
  0x56   :  { %3275 = vsyncadd [#allocation3], 4294961152 }
  0x57   :  { %3276 = dma.done.wait [#allocation6], 12416  }
  0x58   :  { %3277 = vsyncadd [#allocation6], 4294954880 }
  0x59   :  { %3278 = dma.done.wait [#allocation9], 8192  }
  0x5a   :  { %3279 = vsyncadd [#allocation9], 4294959104  ;;  %v206_v0 = vlaneseq  ;;  %v129_v4 = vld [vmem:[#allocation2 + $0xf0] sm:$0xff]  ;;  %v130_v5 = vld [vmem:[#allocation2 + $0xf8] sm:$0xff]  ;;  %vm559_vm0 = vcmask 1041409   ;;  %vm561_vm1 = vcmask 1042434  }
  0x5b   :  { %v131_v6 = vld [vmem:[#allocation2 + $0x100] sm:$0xff]  ;;  %2934 = vtanh.f32 %v129_v4  ;;  %v124_v9 = vld [vmem:[#allocation2 + $0xc8] sm:$0xff]  ;;  %v125_v10 = vld [vmem:[#allocation2 + $0xd0] sm:$0xff]  ;;  %vm563_vm2 = vcmask 1043459   ;;  %vm565_vm3 = vcmask 1044484   ;;  %vm567_vm4 = vcmask 1045509  }
  0x5c   :  { %v3415_v1 = vshrl.u32 %v206_v0, 7  ;;  %v494_v2 = vand.u32 127, %v206_v0  ;;  %v3423_v7 = vld.sshfl [vmem:[%s4215_s2] sm:$0x77 pattern:$0x75316420]  ;;  %2936 = vtanh.f32 %v130_v5 }
  0x5d   :  { %v123_v8 = vld [vmem:[#allocation2 + $0xc0] sm:$0xff]  ;;  %2938 = vtanh.f32 %v131_v6  ;;  %v205_v11 = vcombine.high %v3423_v7, %v3423_v7  ;;  %v132_v13 = vld [vmem:[#allocation2 + $0x108] sm:$0xff]  ;;  %v133_v15 = vld [vmem:[#allocation2 + $0x110] sm:$0xff]  ;;  %vm569_vm5 = vcmask 1046534   ;;  %vm571_vm6 = vcmask 1047559   ;;  %s3295_s30 = smov [#allocation11]  }
  0x5e   :  { %v3418_v3 = vsub.s32 %v494_v2, %v3415_v1  ;;  %v3428_v12 = vsub.s32 0, %v3415_v1  ;;  %2940 = vtanh.f32 %v123_v8  ;;  %v3431_v14 = vsub.s32 1, %v3415_v1  ;;  %v134_v17 = vld [vmem:[#allocation2 + $0x118] sm:$0xff]  ;;  %v127_v20 = vld [vmem:[#allocation2 + $0xe0] sm:$0xff]  ;;  %v128_v22 = vld [vmem:[#allocation2 + $0xe8] sm:$0xff]  ;;  %s2314_s11 = sshll.u32 %s3295_s30, 4  ;;  %s2315_s11 = int_to_ptr.vmem [resolvable:$true] %s2314_s11 }
  0x5f   :  { %2942 = vtanh.f32 %v124_v9  ;;  %v3434_v16 = vsub.s32 2, %v3415_v1  ;;  %v126_v18 = vld [vmem:[#allocation2 + $0xd8] sm:$0xff]  ;;  %v139_v26 = vld [vmem:[#allocation2 + $0x140] sm:$0xff]  ;;  %v140_v29 = vld [vmem:[#allocation2 + $0x148] sm:$0xff]  ;;  %vm582_vm7 = vcmask 64512   ;;  %vm3293_vm8 = vmmov 0   ;;  %p3257_p13 = scmp.lt.s32.totalorder %s2315_s11, %s2315_s11 }
  0x60   :  { %4259 = vst [vmem:[#allocation16_spill] sm:$0xff] %v3428_v12  ;;  %4260 = vst [vmem:[#allocation17_spill] sm:$0xff] %v3431_v14  ;;  %2944 = vtanh.f32 %v125_v10  ;;  %v3437_v19 = vrot.slane %v205_v11, %v3428_v12  ;;  %v3440_v21 = vrot.slane %v205_v11, %v3431_v14  ;;  %v138_v24 = vld [vmem:[#allocation2 + $0x138] sm:$0xff]  ;;  %v135_v32 = vld [vmem:[#allocation2 + $0x120] sm:$0xff]  ;;  %s3252_s1 = scalar_lea.vmem %s2315_s11, 128 }
  0x61   :  { %4261 = vst [vmem:[#allocation18_spill] sm:$0xff] %v3434_v16  ;;  %2946 = vtanh.f32 %v132_v13  ;;  %v3443_v23 = vrot.slane %v205_v11, %v3434_v16  ;;  %v136_v35 = vld [vmem:[#allocation2 + $0x128] sm:$0xff]  ;;  %v137_v39 = vld [vmem:[#allocation2 + $0x130] sm:$0xff]  ;;  %v146_v50 = vld [vmem:[#allocation2 + $0x178] sm:$0xff]  ;;  %p3253_p12 = scmp.ne.s32.totalorder %s2315_s11, %s3252_s1  ;;  %p3258_p0 = scmp.lt.s32.totalorder %s3252_s1, %s3252_s1 }
  0x62   :  { %2948 = vtanh.f32 %v133_v15  ;;  %v144_v42 = vld [vmem:[#allocation2 + $0x168] sm:$0xff]  ;;  %v145_v46 = vld [vmem:[#allocation2 + $0x170] sm:$0xff]  ;;  %v142_v57 = vld [vmem:[#allocation2 + $0x158] sm:$0xff] }
  0x63   :  { %2950 = vtanh.f32 %v134_v17  ;;  %v141_v53 = vld [vmem:[#allocation2 + $0x150] sm:$0xff]  ;;  %v143_v61 = vld [vmem:[#allocation2 + $0x160] sm:$0xff]  ;;  %p3259_p1 = por %p3258_p0, %p3257_p13 }
  0x64   :  { %2952 = vtanh.f32 %v126_v18 }
  0x65   :  { %v2935_v25 = vpop.eup %2934  ;;  %2954 = vtanh.f32 %v127_v20  ;;  %p3260_p2 = pnand %p3259_p1, %p3253_p12 }
  0x66   :  { %v2937_v27 = vpop.eup %2936  ;;  %v266_v28 = vmul.f32 %v2935_v25, %v3437_v19  ;;  %2956 = vtanh.f32 %v128_v22 }
  0x67   :  { %v2939_v30 = vpop.eup %2938  ;;  %v267_v31 = vmul.f32 %v2937_v27, %v3440_v21  ;;  %2958 = vtanh.f32 %v138_v24 }
  0x68   :  { %v2941_v33 = vpop.eup %2940  ;;  %v268_v34 = vmul.f32 %v2939_v30, %v3443_v23  ;;  %2960 = vtanh.f32 %v139_v26 }
  0x69   :  { %v2943_v36 = vpop.eup %2942  ;;  %v324_v37 = vadd.f32 %v267_v31, %v266_v28  ;;  %v260_v38 = vmul.f32 %v2941_v33, %v3437_v19  ;;  %2962 = vtanh.f32 %v140_v29 }
  0x6a   :  { %v2945_v40 = vpop.eup %2944  ;;  %v261_v41 = vmul.f32 %v2943_v36, %v3440_v21  ;;  %2964 = vtanh.f32 %v135_v32 }
  0x6b   :  { %v2947_v43 = vpop.eup %2946  ;;  %v325_v44 = vadd.f32 %v324_v37, %v268_v34  ;;  %v262_v45 = vmul.f32 %v2945_v40, %v3443_v23  ;;  %2966 = vtanh.f32 %v136_v35 }
  0x6c   :  { %v2949_v47 = vpop.eup %2948  ;;  %v316_v48 = vadd.f32 %v261_v41, %v260_v38  ;;  %v269_v49 = vmul.f32 %v2947_v43, %v3437_v19  ;;  %2968 = vtanh.f32 %v137_v39 }
  0x6d   :  { %v2951_v51 = vpop.eup %2950  ;;  %326 = vadd.xlane.f32.xlu1 %v325_v44  ;;  %v270_v52 = vmul.f32 %v2949_v47, %v3440_v21  ;;  %2970 = vtanh.f32 %v144_v42 }
  0x6e   :  { %v2953_v54 = vpop.eup %2952  ;;  %v317_v55 = vadd.f32 %v316_v48, %v262_v45  ;;  %v271_v56 = vmul.f32 %v2951_v51, %v3443_v23  ;;  %2972 = vtanh.f32 %v145_v46  ;;  %v147_v45 = vld [vmem:[#allocation5] sm:$0xff]  ;;  %v3472_v48 = vsub.s32 3, %v3415_v1 }
  0x6f   :  { %v2955_v58 = vpop.eup %2954  ;;  %v328_v59 = vadd.f32 %v270_v52, %v269_v49  ;;  %v263_v60 = vmul.f32 %v2953_v54, %v3437_v19  ;;  %2974 = vtanh.f32 %v146_v50  ;;  %v359_v46 = vrot.slane %v147_v45, %v3431_v14 }
  0x70   :  { %v2957_v62 = vpop.eup %2956  ;;  %318 = vadd.xlane.f32.xlu0 %v317_v55  ;;  %v264_v63 = vmul.f32 %v2955_v58, %v3440_v21  ;;  %2976 = vtanh.f32 %v141_v53  ;;  %v366_v47 = vrot.slane %v147_v45, %v3434_v16  ;;  %v3480_v49 = vsub.s32 5, %v3415_v1  ;;  %v100_v58 = vld [vmem:[#allocation2 + $0x8] sm:$0xff] }
  0x71   :  { %v2959_v0 = vpop.eup %2958  ;;  %v329_v2 = vadd.f32 %v328_v59, %v271_v56  ;;  %v265_v4 = vmul.f32 %v2957_v62, %v3443_v23  ;;  %2978 = vtanh.f32 %v142_v57  ;;  %v3291_v50 = vmov 0   ;;  %v99_v57 = vld [vmem:[#allocation2] sm:$0xff]  ;;  %v101_v59 = vld [vmem:[#allocation2 + $0x10] sm:$0xff] }
  0x72   :  { %v2961_v5 = vpop.eup %2960  ;;  %v320_v6 = vadd.f32 %v264_v63, %v263_v60  ;;  %v275_v8 = vmul.f32 %v2959_v0, %v3437_v19  ;;  %2980 = vtanh.f32 %v143_v61  ;;  %2933 = vset.pattern.permute.xlu1 %v3291_v50  ;;  %2932 = vset.pattern.permute.xlu0 %v3291_v50  ;;  %v387_v52 = vrot.slane %v147_v45, %v3480_v49  ;;  %v105_v60 = vld [vmem:[#allocation2 + $0x30] sm:$0xff]  ;;  %v106_v61 = vld [vmem:[#allocation2 + $0x38] sm:$0xff]  ;;  %v107_v62 = vld [vmem:[#allocation2 + $0x40] sm:$0xff] }
  0x73   :  { %v2963_v9 = vpop.eup %2962  ;;  %330 = vadd.xlane.f32.xlu1 %v329_v2  ;;  %v276_v10 = vmul.f32 %v2961_v5, %v3440_v21  ;;  %v3485_v53 = vsub.s32 6, %v3415_v1  ;;  %v3488_v54 = vsub.s32 7, %v3415_v1  ;;  %2982 = vtanh.f32 %v99_v57  ;;  %v103_v63 = vld [vmem:[#allocation2 + $0x20] sm:$0xff]  ;;  %v104_v0 = vld [vmem:[#allocation2 + $0x28] sm:$0xff]  ;;  %v110_v5 = vld [vmem:[#allocation2 + $0x58] sm:$0xff] }
  0x74   :  { %v2965_v11 = vpop.eup %2964  ;;  %v321_v13 = vadd.f32 %v320_v6, %v265_v4  ;;  %v277_v15 = vmul.f32 %v2963_v9, %v3443_v23  ;;  %2984 = vtanh.f32 %v100_v58  ;;  %v108_v2 = vld [vmem:[#allocation2 + $0x48] sm:$0xff]  ;;  %v109_v4 = vld [vmem:[#allocation2 + $0x50] sm:$0xff]  ;;  %v114_v6 = vld [vmem:[#allocation2 + $0x78] sm:$0xff] }
  0x75   :  { %v2967_v17 = vpop.eup %2966  ;;  %v336_v18 = vadd.f32 %v276_v10, %v275_v8  ;;  %v272_v20 = vmul.f32 %v2965_v11, %v3437_v19  ;;  %v394_v55 = vrot.slane %v147_v45, %v3485_v53  ;;  %v401_v56 = vrot.slane %v147_v45, %v3488_v54  ;;  %v115_v9 = vld [vmem:[#allocation2 + $0x80] sm:$0xff]  ;;  %v116_v11 = vld [vmem:[#allocation2 + $0x88] sm:$0xff] }
  0x76   :  { %v2969_v22 = vpop.eup %2968  ;;  %322 = vadd.xlane.f32.xlu0 %v321_v13  ;;  %v273_v24 = vmul.f32 %v2967_v17, %v3440_v21  ;;  %2986 = vtanh.f32 %v101_v59 }
  0x77   :  { %v2971_v25 = vpop.eup %2970  ;;  %v337_v26 = vadd.f32 %v336_v18, %v277_v15  ;;  %v274_v27 = vmul.f32 %v2969_v22, %v3443_v23  ;;  %2988 = vtanh.f32 %v105_v60  ;;  %v111_v15 = vld [vmem:[#allocation2 + $0x60] sm:$0xff]  ;;  %v3494_v18 = vrot.slane %v3423_v7, %v3428_v12  ;;  %v112_v22 = vld [vmem:[#allocation2 + $0x68] sm:$0xff] }
  0x78   :  { %v2973_v28 = vpop.eup %2972  ;;  %v332_v29 = vadd.f32 %v273_v24, %v272_v20  ;;  %v281_v30 = vmul.f32 %v2971_v25, %v3437_v19  ;;  %2990 = vtanh.f32 %v106_v61  ;;  %v3498_v20 = vrot.slane %v3423_v7, %v3431_v14  ;;  %v120_v25 = vld [vmem:[#allocation2 + $0xa8] sm:$0xff] }
  0x79   :  { %v2975_v31 = vpop.eup %2974  ;;  %338 = vadd.xlane.f32.xlu1 %v337_v26  ;;  %v282_v32 = vmul.f32 %v2973_v28, %v3440_v21  ;;  %2992 = vtanh.f32 %v107_v62 }
  0x7a   :  { %v2977_v33 = vpop.eup %2976  ;;  %v333_v34 = vadd.f32 %v332_v29, %v274_v27  ;;  %v283_v35 = vmul.f32 %v2975_v31, %v3443_v23  ;;  %v121_v27 = vld [vmem:[#allocation2 + $0xb0] sm:$0xff]  ;;  %v3502_v31 = vrot.slane %v3423_v7, %v3434_v16 }
  0x7b   :  { %v2979_v36 = vpop.eup %2978  ;;  %v344_v37 = vadd.f32 %v282_v32, %v281_v30  ;;  %v278_v38 = vmul.f32 %v2977_v33, %v3437_v19  ;;  %v3475_v19 = vsub.s32 4, %v3415_v1  ;;  %v102_v1 = vld [vmem:[#allocation2 + $0x18] sm:$0xff]  ;;  %v113_v29 = vld [vmem:[#allocation2 + $0x70] sm:$0xff] }
  0x7c   :  { %v2981_v39 = vpop.eup %2980  ;;  %334 = vadd.xlane.f32.xlu0 %v333_v34  ;;  %v279_v40 = vmul.f32 %v2979_v36, %v3440_v21  ;;  %v352_v21 = vrot.slane %v147_v45, %v3428_v12  ;;  %2994 = vtanh.f32 %v102_v1  ;;  %v117_v34 = vld [vmem:[#allocation2 + $0x90] sm:$0xff]  ;;  %v118_v36 = vld [vmem:[#allocation2 + $0x98] sm:$0xff] }
  0x7d   :  { %v345_v41 = vadd.f32 %v344_v37, %v283_v35  ;;  %v280_v42 = vmul.f32 %v2981_v39, %v3443_v23  ;;  %v373_v23 = vrot.slane %v147_v45, %v3472_v48  ;;  %v380_v51 = vrot.slane %v147_v45, %v3475_v19  ;;  %v2983_v8 = vpop.eup %2982 }
  0x7e   :  { %v340_v43 = vadd.f32 %v279_v40, %v278_v38  ;;  %2996 = vtanh.f32 %v103_v63  ;;  %v2985_v10 = vpop.eup %2984  ;;  %v236_v32 = vmul.f32 %v2983_v8, %v3494_v18  ;;  %v122_v38 = vld [vmem:[#allocation2 + $0xb8] sm:$0xff] }
  0x7f   :  { %346 = vadd.xlane.f32.xlu1 %v345_v41  ;;  %2998 = vtanh.f32 %v104_v0  ;;  %v237_v33 = vmul.f32 %v2985_v10, %v3498_v20 }
  0x80   :  { %v341_v44 = vadd.f32 %v340_v43, %v280_v42  ;;  %3000 = vtanh.f32 %v108_v2  ;;  %v2987_v13 = vpop.eup %2986 }
  0x81   :  { %3002 = vtanh.f32 %v109_v4  ;;  %v2989_v17 = vpop.eup %2988  ;;  %v238_v41 = vmul.f32 %v2987_v13, %v3502_v31  ;;  %v284_v42 = vadd.f32 %v237_v33, %v236_v32 }
  0x82   :  { %342 = vadd.xlane.f32.xlu0 %v341_v44  ;;  %3004 = vtanh.f32 %v110_v5  ;;  %v2991_v24 = vpop.eup %2990  ;;  %v242_v7 = vmul.f32 %v2989_v17, %v3494_v18 }
  0x83   :  { %3006 = vtanh.f32 %v114_v6  ;;  %v2993_v26 = vpop.eup %2992  ;;  %v243_v44 = vmul.f32 %v2991_v24, %v3498_v20 }
  0x84   :  { %3008 = vtanh.f32 %v115_v9  ;;  %v244_v57 = vmul.f32 %v2993_v26, %v3502_v31 }
  0x85   :  { %3010 = vtanh.f32 %v116_v11  ;;  %v292_v58 = vadd.f32 %v243_v44, %v242_v7 }
  0x86   :  { %3012 = vtanh.f32 %v111_v15  ;;  %v2995_v28 = vpop.eup %2994 }
  0x87   :  { %3014 = vtanh.f32 %v112_v22  ;;  %v239_v45 = vmul.f32 %v2995_v28, %v3494_v18  ;;  %v293_v6 = vadd.f32 %v292_v58, %v244_v57 }
  0x88   :  { %v2997_v30 = vpop.eup %2996  ;;  %3016 = vtanh.f32 %v120_v25 }
  0x89   :  { %v2999_v35 = vpop.eup %2998  ;;  %3018 = vtanh.f32 %v121_v27 }
  0x8a   :  { %v3001_v37 = vpop.eup %3000  ;;  %3020 = vtanh.f32 %v113_v29  ;;  %v241_v59 = vmul.f32 %v2999_v35, %v3502_v31 }
  0x8b   :  { %v3003_v39 = vpop.eup %3002  ;;  %3022 = vtanh.f32 %v117_v34 }
  0x8c   :  { %v3005_v40 = vpop.eup %3004  ;;  %3024 = vtanh.f32 %v118_v36 }
  0x8d   :  { %v3007_v43 = vpop.eup %3006  ;;  %3026 = vtanh.f32 %v122_v38  ;;  %v247_v2 = vmul.f32 %v3005_v40, %v3502_v31 }
  0x8e   :  { %v251_v62 = vmul.f32 %v3007_v43, %v3494_v18 }
  0x90   :  { %361 = vbcast.lane.b32.xlu1 %v359_v46, 256  ;;  %v240_v46 = vmul.f32 %v2997_v30, %v3498_v20 }
  0x92   :  { %v288_v60 = vadd.f32 %v240_v46, %v239_v45 }
  0x94   :  { %368 = vbcast.lane.b32.xlu1 %v366_v47, 256  ;;  %v119_v47 = vld [vmem:[#allocation2 + $0xa0] sm:$0xff]  ;;  %v289_v8 = vadd.f32 %v288_v60, %v241_v59 }
  0x95   :  { %3028 = vtanh.f32 %v119_v47 }
  0x98   :  { %354 = vbcast.lane.b32.xlu0 %v352_v21, 256  ;;  %375 = vbcast.lane.b32.xlu1 %v373_v23, 256  ;;  %v3009_v21 = vpop.eup %3008 }
  0x99   :  { %v3011_v23 = vpop.eup %3010  ;;  %v252_v1 = vmul.f32 %v3009_v21, %v3498_v20 }
  0x9a   :  { %v3013_v50 = vpop.eup %3012  ;;  %v253_v13 = vmul.f32 %v3011_v23, %v3502_v31 }
  0x9b   :  { %v248_v9 = vmul.f32 %v3013_v50, %v3494_v18  ;;  %v304_v15 = vadd.f32 %v252_v1, %v251_v62 }
  0x9c   :  { %382 = vbcast.lane.b32.xlu0 %v380_v51, 256  ;;  %389 = vbcast.lane.b32.xlu1 %v387_v52, 256  ;;  %v285_v51 = vadd.f32 %v284_v42, %v238_v41  ;;  %v245_v52 = vmul.f32 %v3001_v37, %v3494_v18 }
  0x9d   :  { %v305_v32 = vadd.f32 %v304_v15, %v253_v13 }
  0xa0   :  { %396 = vbcast.lane.b32.xlu0 %v394_v55, 256  ;;  %403 = vbcast.lane.b32.xlu1 %v401_v56, 256  ;;  %v246_v55 = vmul.f32 %v3003_v39, %v3498_v20  ;;  %v3015_v56 = vpop.eup %3014 }
  0xa1   :  { %v3017_v61 = vpop.eup %3016  ;;  %v249_v10 = vmul.f32 %v3015_v56, %v3498_v20 }
  0xa2   :  { %v3019_v63 = vpop.eup %3018  ;;  %v296_v4 = vadd.f32 %v246_v55, %v245_v52  ;;  %v257_v17 = vmul.f32 %v3017_v61, %v3494_v18 }
  0xa3   :  { %v3021_v0 = vpop.eup %3020  ;;  %v258_v22 = vmul.f32 %v3019_v63, %v3498_v20  ;;  %v300_v27 = vadd.f32 %v249_v10, %v248_v9 }
  0xa4   :  { %v3023_v5 = vpop.eup %3022  ;;  %v297_v25 = vadd.f32 %v296_v4, %v247_v2  ;;  %v250_v26 = vmul.f32 %v3021_v0, %v3502_v31 }
  0xa5   :  { %v3025_v11 = vpop.eup %3024  ;;  %v254_v28 = vmul.f32 %v3023_v5, %v3494_v18  ;;  %v312_v34 = vadd.f32 %v258_v22, %v257_v17 }
  0xa6   :  { %v3027_v24 = vpop.eup %3026  ;;  %v255_v29 = vmul.f32 %v3025_v11, %v3498_v20  ;;  %v301_v35 = vadd.f32 %v300_v27, %v250_v26 }
  0xa7   :  { %v3029_v30 = vpop.eup %3028  ;;  %v259_v33 = vmul.f32 %v3027_v24, %v3502_v31 }
  0xa8   :  { %v256_v36 = vmul.f32 %v3029_v30, %v3502_v31  ;;  %v308_v37 = vadd.f32 %v255_v29, %v254_v28 }
  0xa9   :  { %v313_v38 = vadd.f32 %v312_v34, %v259_v33 }
  0xaa   :  { %v309_v39 = vadd.f32 %v308_v37, %v256_v36 }
  0xbf   :  { %286 = vadd.xlane.f32.xlu0 %v285_v51 }
  0xc3   :  { %294 = vadd.xlane.f32.xlu0 %v293_v6 }
  0xc4   :  { %290 = vadd.xlane.f32.xlu1 %v289_v8 }
  0xc7   :  { %298 = vadd.xlane.f32.xlu0 %v297_v25 }
  0xc8   :  { %306 = vadd.xlane.f32.xlu1 %v305_v32 }
  0xcb   :  { %302 = vadd.xlane.f32.xlu0 %v301_v35 }
  0xcc   :  { %314 = vadd.xlane.f32.xlu1 %v313_v38 }
  0xcf   :  { %310 = vadd.xlane.f32.xlu0 %v309_v39 }
  0xfa   :  { %v327_v18 = vpop.xlane.xlu1 %326 }
  0xfd   :  { %v319_v40 = vpop.xlane.xlu0 %318 }
 0x100   :  { %v331_v20 = vpop.xlane.xlu1 %330 }
 0x103   :  { %v323_v41 = vpop.xlane.xlu0 %322 }
 0x106   :  { %v339_v42 = vpop.xlane.xlu1 %338 }
 0x109   :  { %v335_v7 = vpop.xlane.xlu0 %334 }
 0x10c   :  { %v347_v43 = vpop.xlane.xlu1 %346 }
 0x10f   :  { %v343_v44 = vpop.xlane.xlu0 %342 }
 0x110   :  { %v362_v45 = vpop.permute.xlu1 %361 }
 0x111   :  { %v3528_v46 = vmul.f32 %v362_v45, %v323_v41 }
 0x113   :  { %v355_v47 = vpop.permute.xlu0 %354  ;;  %473 = vperm.xlu1 %2933, %v3528_v46  }
 0x114   :  { %v3531_v31 = vmul.f32 %v355_v47, %v319_v40  ;;  %v369_v21 = vpop.permute.xlu1 %368 }
 0x115   :  { %v3533_v23 = vmul.f32 %v369_v21, %v327_v18 }
 0x116   :  { %470 = vperm.xlu0 %2932, %v3531_v31  }
 0x117   :  { %476 = vperm.xlu1 %2933, %v3533_v23   ;;  %v383_v52 = vpop.permute.xlu0 %382 }
 0x118   :  { %v376_v50 = vpop.permute.xlu1 %375  ;;  %v3540_v55 = vmul.f32 %v383_v52, %v335_v7 }
 0x119   :  { %v3537_v51 = vmul.f32 %v376_v50, %v331_v20 }
 0x11b   :  { %479 = vperm.xlu1 %2933, %v3537_v51   ;;  %v397_v58 = vpop.permute.xlu0 %396 }
 0x11c   :  { %v390_v56 = vpop.permute.xlu1 %389  ;;  %v3546_v59 = vmul.f32 %v397_v58, %v343_v44 }
 0x11d   :  { %v3543_v57 = vmul.f32 %v390_v56, %v339_v42 }
 0x11f   :  { %482 = vperm.xlu1 %2933, %v3540_v55  }
 0x120   :  { %v404_v60 = vpop.permute.xlu1 %403 }
 0x121   :  { %v3549_v61 = vmul.f32 %v404_v60, %v347_v43 }
 0x123   :  { %485 = vperm.xlu1 %2933, %v3543_v57  }
 0x127   :  { %488 = vperm.xlu1 %2933, %v3546_v59  }
 0x12b   :  { %491 = vperm.xlu1 %2933, %v3549_v61  }
 0x14c   :  { %v287_v62 = vpop.xlane.xlu0 %286 }
 0x14d   :  { %v3552_v1 = vmul.f32 %v355_v47, %v287_v62 }
 0x14f   :  { %446 = vperm.xlu1 %2933, %v3552_v1  }
 0x150   :  { %v295_v63 = vpop.xlane.xlu0 %294 }
 0x151   :  { %v3555_v0 = vmul.f32 %v369_v21, %v295_v63  ;;  %v291_v2 = vpop.xlane.xlu1 %290 }
 0x152   :  { %v3557_v4 = vmul.f32 %v362_v45, %v291_v2 }
 0x153   :  { %452 = vperm.xlu1 %2933, %v3555_v0  }
 0x154   :  { %v299_v5 = vpop.xlane.xlu0 %298  ;;  %449 = vperm.xlu0 %2932, %v3557_v4  }
 0x155   :  { %v307_v6 = vpop.xlane.xlu1 %306  ;;  %v3561_v8 = vmul.f32 %v376_v50, %v299_v5 }
 0x156   :  { %v3566_v11 = vmul.f32 %v390_v56, %v307_v6 }
 0x158   :  { %v303_v9 = vpop.xlane.xlu0 %302  ;;  %455 = vperm.xlu0 %2932, %v3561_v8  }
 0x159   :  { %v3564_v10 = vmul.f32 %v383_v52, %v303_v9  ;;  %v315_v13 = vpop.xlane.xlu1 %314 }
 0x15a   :  { %v3572_v22 = vmul.f32 %v404_v60, %v315_v13 }
 0x15b   :  { %458 = vperm.xlu1 %2933, %v3564_v10  }
 0x15c   :  { %v311_v15 = vpop.xlane.xlu0 %310  ;;  %461 = vperm.xlu0 %2932, %v3566_v11  }
 0x15d   :  { %v3570_v17 = vmul.f32 %v397_v58, %v311_v15 }
 0x15f   :  { %464 = vperm.xlu1 %2933, %v3570_v17  }
 0x160   :  { %467 = vperm.xlu0 %2932, %v3572_v22  }
 0x192   :  { %v474_v24 = vpop.permute.xlu1 %473 }
 0x193   :  { %v534_v30 = vrot.slane %v474_v24, %v3418_v3 }
 0x195   :  { %v471_v28 = vpop.permute.xlu0 %470 }
 0x196   :  { %v477_v25 = vpop.permute.xlu1 %476  ;;  %v530_v32 = vrot.slane %v471_v28, %v3418_v3 }
 0x197   :  { %v538_v33 = vrot.slane %v477_v25, %v3418_v3 }
 0x198   :  { %v573_v37 = vsel %vm559_vm0, %v534_v30, %v530_v32 }
 0x199   :  { %v574_v39 = vsel %vm561_vm1, %v538_v33, %v573_v37 }
 0x19a   :  { %v480_v26 = vpop.permute.xlu1 %479 }
 0x19b   :  { %v542_v34 = vrot.slane %v480_v26, %v3418_v3 }
 0x19d   :  { %v575_v40 = vsel %vm563_vm2, %v542_v34, %v574_v39 }
 0x19e   :  { %v483_v27 = vpop.permute.xlu1 %482 }
 0x19f   :  { %v546_v35 = vrot.slane %v483_v27, %v3418_v3 }
 0x1a1   :  { %v576_v20 = vsel %vm565_vm3, %v546_v35, %v575_v40 }
 0x1a2   :  { %v486_v29 = vpop.permute.xlu1 %485 }
 0x1a3   :  { %v550_v38 = vrot.slane %v486_v29, %v3418_v3 }
 0x1a5   :  { %v577_v42 = vsel %vm567_vm4, %v550_v38, %v576_v20 }
 0x1a6   :  { %v489_v36 = vpop.permute.xlu1 %488 }
 0x1a7   :  { %v554_v18 = vrot.slane %v489_v36, %v3418_v3 }
 0x1a9   :  { %v578_v43 = vsel %vm569_vm5, %v554_v18, %v577_v42 }
 0x1aa   :  { %v492_v41 = vpop.permute.xlu1 %491 }
 0x1ab   :  { %v558_v7 = vrot.slane %v492_v41, %v3418_v3 }
 0x1ad   :  { %v579_v44 = vsel %vm571_vm6, %v558_v7, %v578_v43 }
 0x1ae   :  { %v586_v45 = vsel %vm582_vm7, %v579_v44, -inf }
 0x1af   :  { %587 = vmax.xlane.f32.xlu1 %v586_v45 }
 0x1ce   :  { %v447_v47 = vpop.permute.xlu1 %446 }
 0x1cf   :  { %v498_v50 = vrot.slane %v447_v47, %v3418_v3 }
 0x1d2   :  { %v453_v52 = vpop.permute.xlu1 %452 }
 0x1d3   :  { %v450_v21 = vpop.permute.xlu0 %449  ;;  %v506_v60 = vrot.slane %v453_v52, %v3418_v3 }
 0x1d4   :  { %v502_v56 = vrot.slane %v450_v21, %v3418_v3 }
 0x1d6   :  { %v560_v58 = vsel %vm559_vm0, %v502_v56, %v498_v50 }
 0x1d7   :  { %v456_v62 = vpop.permute.xlu0 %455  ;;  %v562_v2 = vsel %vm561_vm1, %v506_v60, %v560_v58 }
 0x1d8   :  { %v510_v63 = vrot.slane %v456_v62, %v3418_v3 }
 0x1da   :  { %v459_v5 = vpop.permute.xlu1 %458  ;;  %v564_v6 = vsel %vm563_vm2, %v510_v63, %v562_v2 }
 0x1db   :  { %v514_v9 = vrot.slane %v459_v5, %v3418_v3  ;;  %v462_v13 = vpop.permute.xlu0 %461 }
 0x1dc   :  { %v518_v15 = vrot.slane %v462_v13, %v3418_v3 }
 0x1dd   :  { %v566_v24 = vsel %vm565_vm3, %v514_v9, %v564_v6 }
 0x1de   :  { %v465_v25 = vpop.permute.xlu1 %464  ;;  %v568_v26 = vsel %vm567_vm4, %v518_v15, %v566_v24 }
 0x1df   :  { %v522_v27 = vrot.slane %v465_v25, %v3418_v3  ;;  %v468_v28 = vpop.permute.xlu0 %467 }
 0x1e0   :  { %v526_v29 = vrot.slane %v468_v28, %v3418_v3 }
 0x1e1   :  { %v570_v30 = vsel %vm569_vm5, %v522_v27, %v568_v26 }
 0x1e2   :  { %v572_v32 = vsel %vm571_vm6, %v526_v29, %v570_v30 }
 0x1e3   :  { %v583_v33 = vsel %vm582_vm7, %v572_v32, -inf }
 0x1e4   :  { %584 = vmax.xlane.f32.xlu0 %v583_v33 }
 0x23c   :  { %v588_v34 = vpop.xlane.xlu1 %587 }
 0x23d   :  { %v626_v35 = vrot.slane %v588_v34, %v3428_v12  ;;  %v630_v36 = vrot.slane %v588_v34, %v3431_v14  ;;  %v634_v37 = vrot.slane %v588_v34, %v3434_v16  ;;  %v638_v38 = vrot.slane %v588_v34, %v3472_v48 }
 0x23e   :  { %v646_v39 = vrot.slane %v588_v34, %v3480_v49  ;;  %v642_v41 = vrot.slane %v588_v34, %v3475_v19  ;;  %v654_v44 = vrot.slane %v588_v34, %v3488_v54  ;;  %v650_v21 = vrot.slane %v588_v34, %v3485_v53 }
 0x23f   :  { %v679_v18 = vsub.f32 %v3531_v31, %v626_v35  ;;  %v680_v40 = vsub.f32 %v3528_v46, %v630_v36  ;;  %v682_v20 = vsub.f32 %v3537_v51, %v638_v38  ;;  %v681_v42 = vsub.f32 %v3533_v23, %v634_v37 }
 0x240   :  { %v684_v45 = vsub.f32 %v3543_v57, %v646_v39  ;;  %v683_v31 = vsub.f32 %v3540_v55, %v642_v41  ;;  %v686_v51 = vsub.f32 %v3549_v61, %v654_v44  ;;  %v685_v23 = vsub.f32 %v3546_v59, %v650_v21 }
 0x241   :  { %v703_v7 = vmul.f32 1.442695, %v679_v18  ;;  %v705_v43 = vmul.f32 1.442695, %v680_v40  ;;  %v709_v47 = vmul.f32 1.442695, %v682_v20 }
 0x242   :  { %v707_v46 = vmul.f32 1.442695, %v681_v42  ;;  %v713_v50 = vmul.f32 1.442695, %v684_v45  ;;  %v711_v52 = vmul.f32 1.442695, %v683_v31 }
 0x243   :  { %3030 = vpow2.f32 %v703_v7  ;;  %v717_v56 = vmul.f32 1.442695, %v686_v51  ;;  %v715_v57 = vmul.f32 1.442695, %v685_v23 }
 0x244   :  { %3032 = vpow2.f32 %v705_v43 }
 0x245   :  { %3034 = vpow2.f32 %v709_v47 }
 0x246   :  { %3036 = vpow2.f32 %v707_v46 }
 0x247   :  { %3038 = vpow2.f32 %v713_v50 }
 0x248   :  { %3040 = vpow2.f32 %v711_v52 }
 0x249   :  { %3042 = vpow2.f32 %v717_v56 }
 0x24a   :  { %3044 = vpow2.f32 %v715_v57 }
 0x24d   :  { %v3624_v58 = vpop.eup %3030 }
 0x24e   :  { %v3626_v60 = vpop.eup %3032  ;;  %760 = vperm.xlu0 %2932, %v3624_v58  }
 0x24f   :  { %763 = vperm.xlu1 %2933, %v3626_v60   ;;  %v3630_v55 = vpop.eup %3034 }
 0x250   :  { %v3632_v61 = vpop.eup %3036 }
 0x251   :  { %v3636_v59 = vpop.eup %3038 }
 0x252   :  { %769 = vperm.xlu0 %2932, %v3630_v55   ;;  %v3638_v62 = vpop.eup %3040 }
 0x253   :  { %766 = vperm.xlu1 %2933, %v3632_v61   ;;  %v3642_v63 = vpop.eup %3042 }
 0x254   :  { %v3644_v2 = vpop.eup %3044 }
 0x256   :  { %775 = vperm.xlu0 %2932, %v3636_v59  }
 0x257   :  { %772 = vperm.xlu1 %2933, %v3638_v62  }
 0x25a   :  { %781 = vperm.xlu0 %2932, %v3642_v63  }
 0x25b   :  { %778 = vperm.xlu1 %2933, %v3644_v2  }
 0x271   :  { %v585_v5 = vpop.xlane.xlu0 %584 }
 0x272   :  { %v594_v6 = vrot.slane %v585_v5, %v3428_v12  ;;  %v598_v9 = vrot.slane %v585_v5, %v3431_v14  ;;  %v602_v13 = vrot.slane %v585_v5, %v3434_v16  ;;  %v606_v15 = vrot.slane %v585_v5, %v3472_v48 }
 0x273   :  { %v610_v24 = vrot.slane %v585_v5, %v3475_v19  ;;  %v614_v28 = vrot.slane %v585_v5, %v3480_v49  ;;  %v618_v33 = vrot.slane %v585_v5, %v3485_v53  ;;  %v622_v36 = vrot.slane %v585_v5, %v3488_v54 }
 0x274   :  { %v671_v25 = vsub.f32 %v3552_v1, %v594_v6  ;;  %v672_v26 = vsub.f32 %v3557_v4, %v598_v9  ;;  %v673_v27 = vsub.f32 %v3555_v0, %v602_v13  ;;  %v674_v29 = vsub.f32 %v3561_v8, %v606_v15 }
 0x275   :  { %v675_v34 = vsub.f32 %v3564_v10, %v610_v24  ;;  %v676_v1 = vsub.f32 %v3566_v11, %v614_v28  ;;  %v677_v0 = vsub.f32 %v3570_v17, %v618_v33  ;;  %v678_v8 = vsub.f32 %v3572_v22, %v622_v36 }
 0x276   :  { %v687_v30 = vmul.f32 1.442695, %v671_v25  ;;  %v689_v32 = vmul.f32 1.442695, %v672_v26  ;;  %v691_v35 = vmul.f32 1.442695, %v673_v27 }
 0x277   :  { %v693_v4 = vmul.f32 1.442695, %v674_v29  ;;  %v695_v37 = vmul.f32 1.442695, %v675_v34  ;;  %v697_v38 = vmul.f32 1.442695, %v676_v1 }
 0x278   :  { %3046 = vpow2.f32 %v687_v30  ;;  %v699_v39 = vmul.f32 1.442695, %v677_v0  ;;  %v701_v10 = vmul.f32 1.442695, %v678_v8 }
 0x279   :  { %3048 = vpow2.f32 %v689_v32 }
 0x27a   :  { %3050 = vpow2.f32 %v691_v35 }
 0x27b   :  { %3052 = vpow2.f32 %v693_v4 }
 0x27c   :  { %3054 = vpow2.f32 %v695_v37 }
 0x27d   :  { %3056 = vpow2.f32 %v697_v38 }
 0x27e   :  { %3058 = vpow2.f32 %v699_v39 }
 0x27f   :  { %3060 = vpow2.f32 %v701_v10 }
 0x282   :  { %v3664_v18 = vpop.eup %3046 }
 0x283   :  { %v3666_v40 = vpop.eup %3048  ;;  %736 = vperm.xlu1 %2933, %v3664_v18  }
 0x284   :  { %739 = vperm.xlu0 %2932, %v3666_v40   ;;  %v3670_v11 = vpop.eup %3050 }
 0x285   :  { %v3672_v17 = vpop.eup %3052 }
 0x286   :  { %v3676_v22 = vpop.eup %3054 }
 0x287   :  { %742 = vperm.xlu1 %2933, %v3670_v11   ;;  %v3678_v20 = vpop.eup %3056 }
 0x288   :  { %745 = vperm.xlu0 %2932, %v3672_v17   ;;  %v3682_v41 = vpop.eup %3058 }
 0x289   :  { %v3684_v42 = vpop.eup %3060 }
 0x28b   :  { %748 = vperm.xlu1 %2933, %v3676_v22  }
 0x28c   :  { %751 = vperm.xlu0 %2932, %v3678_v20  }
 0x28f   :  { %754 = vperm.xlu1 %2933, %v3682_v41  }
 0x290   :  { %757 = vperm.xlu0 %2932, %v3684_v42  }
 0x2cd   :  { %v761_v7 = vpop.permute.xlu0 %760 }
 0x2ce   :  { %v764_v43 = vpop.permute.xlu1 %763  ;;  %v818_v45 = vrot.slane %v761_v7, %v3418_v3 }
 0x2cf   :  { %v822_v44 = vrot.slane %v764_v43, %v3418_v3 }
 0x2d1   :  { %v770_v47 = vpop.permute.xlu0 %769  ;;  %v854_v46 = vsel %vm559_vm0, %v822_v44, %v818_v45 }
 0x2d2   :  { %v767_v21 = vpop.permute.xlu1 %766  ;;  %v830_v51 = vrot.slane %v770_v47, %v3418_v3 }
 0x2d3   :  { %v826_v31 = vrot.slane %v767_v21, %v3418_v3 }
 0x2d5   :  { %v855_v50 = vsel %vm561_vm1, %v826_v31, %v854_v46  ;;  %v776_v23 = vpop.permute.xlu0 %775 }
 0x2d6   :  { %v773_v52 = vpop.permute.xlu1 %772  ;;  %v856_v57 = vsel %vm563_vm2, %v830_v51, %v855_v50  ;;  %v838_v5 = vrot.slane %v776_v23, %v3418_v3  ;;  %v1512_v50 = vld [vmem:[#allocation7 + $0x200] sm:$0xff]  ;;  %v1513_v23 = vld [vmem:[#allocation7 + $0x208] sm:$0xff] }
 0x2d7   :  { %v834_v56 = vrot.slane %v773_v52, %v3418_v3  ;;  %v1528_v52 = vld [vmem:[#allocation7 + $0x280] sm:$0xff] }
 0x2d9   :  { %v857_v6 = vsel %vm565_vm3, %v834_v56, %v856_v57  ;;  %v782_v9 = vpop.permute.xlu0 %781  ;;  %v4223_v56 = vmov 0.0|0.0   ;;  %v2710_v57 = vpack.c.bf16 %v1513_v23, %v1512_v50  ;;  %v1532_v50 = vld [vmem:[#allocation7 + $0x2a0] sm:$0xff] }
 0x2da   :  { %v779_v13 = vpop.permute.xlu1 %778  ;;  %v846_v15 = vrot.slane %v782_v9, %v3418_v3  ;;  %v858_v25 = vsel %vm567_vm4, %v838_v5, %v857_v6  ;;  %2742 = vmatprep.subr.bf16.mxu1 %v4223_v56  ;;  %v1529_v5 = vld [vmem:[#allocation7 + $0x288] sm:$0xff] }
 0x2db   :  { %v842_v24 = vrot.slane %v779_v13, %v3418_v3  ;;  %v2743_v6 = vpack.c.bf16 %v1529_v5, %v1528_v52  ;;  %2711 = vmatprep.subr.bf16.mxu0 %v2710_v57  ;;  %v1533_v52 = vld [vmem:[#allocation7 + $0x2a8] sm:$0xff] }
 0x2dc   :  { %v2749_v57 = vpack.c.bf16 %v1533_v52, %v1532_v50  ;;  %v4225_v50 = vmov 0.0   ;;  %v1526_v52 = vld [vmem:[#allocation7 + $0x270] sm:$0xff] }
 0x2dd   :  { %v859_v26 = vsel %vm569_vm5, %v842_v24, %v858_v25  ;;  %2744 = vmatpush3.bf16.msra.mxu1 %v2743_v6  ;;  %v1518_v6 = vld [vmem:[#allocation7 + $0x230] sm:$0xff]  ;;  %2532 = vmatprep.mubr.msk.f32.mxu1 %vm3293_vm8, %v4225_v50 }
 0x2de   :  { %v860_v27 = vsel %vm571_vm6, %v846_v15, %v859_v26  ;;  %2745 = vmatprep.subr.bf16.mxu1 %v4223_v56 }
 0x2df   :  { %v866_v28 = vsel %vm582_vm7, %v860_v27, 0.0 }
 0x2e0   :  { %867 = vadd.xlane.f32.xlu1 %v866_v28 }
 0x302   :  { %v737_v29 = vpop.permute.xlu1 %736 }
 0x303   :  { %v740_v30 = vpop.permute.xlu0 %739  ;;  %v786_v32 = vrot.slane %v737_v29, %v3418_v3 }
 0x304   :  { %v790_v33 = vrot.slane %v740_v30, %v3418_v3 }
 0x306   :  { %v743_v34 = vpop.permute.xlu1 %742  ;;  %v847_v1 = vsel %vm559_vm0, %v790_v33, %v786_v32 }
 0x307   :  { %v794_v35 = vrot.slane %v743_v34, %v3418_v3  ;;  %v746_v36 = vpop.permute.xlu0 %745 }
 0x308   :  { %v798_v4 = vrot.slane %v746_v36, %v3418_v3 }
 0x309   :  { %v848_v0 = vsel %vm561_vm1, %v794_v35, %v847_v1 }
 0x30a   :  { %v749_v37 = vpop.permute.xlu1 %748  ;;  %v849_v39 = vsel %vm563_vm2, %v798_v4, %v848_v0 }
 0x30b   :  { %v802_v8 = vrot.slane %v749_v37, %v3418_v3  ;;  %v752_v38 = vpop.permute.xlu0 %751  ;;  %v1496_v37 = vld [vmem:[#allocation7 + $0x180] sm:$0xff] }
 0x30c   :  { %v806_v10 = vrot.slane %v752_v38, %v3418_v3 }
 0x30d   :  { %v850_v7 = vsel %vm565_vm3, %v802_v8, %v849_v39  ;;  %v1497_v8 = vld [vmem:[#allocation7 + $0x188] sm:$0xff] }
 0x30e   :  { %v755_v43 = vpop.permute.xlu1 %754  ;;  %v851_v47 = vsel %vm567_vm4, %v806_v10, %v850_v7  ;;  %v2712_v38 = vpack.c.bf16 %v1497_v8, %v1496_v37  ;;  %v1515_v7 = vld [vmem:[#allocation7 + $0x218] sm:$0xff]  ;;  %v1505_v37 = vld [vmem:[#allocation7 + $0x1c8] sm:$0xff] }
 0x30f   :  { %v810_v44 = vrot.slane %v755_v43, %v3418_v3  ;;  %v758_v45 = vpop.permute.xlu0 %757  ;;  %v1530_v43 = vld [vmem:[#allocation7 + $0x290] sm:$0xff] }
 0x310   :  { %v814_v21 = vrot.slane %v758_v45, %v3418_v3  ;;  %2713 = vmatpush3.bf16.msra.mxu0 %v2712_v38  ;;  %v1531_v45 = vld [vmem:[#allocation7 + $0x298] sm:$0xff] }
 0x311   :  { %v852_v31 = vsel %vm569_vm5, %v810_v44, %v851_v47 }
 0x312   :  { %v853_v46 = vsel %vm571_vm6, %v814_v21, %v852_v31 }
 0x313   :  { %v863_v51 = vsel %vm582_vm7, %v853_v46, 0.0  ;;  %v1516_v46 = vld [vmem:[#allocation7 + $0x220] sm:$0xff] }
 0x314   :  { %864 = vadd.xlane.f32.xlu0 %v863_v51  ;;  %v1517_v51 = vld [vmem:[#allocation7 + $0x228] sm:$0xff] }
 0x315   :  { %v2718_v23 = vpack.c.bf16 %v1517_v51, %v1516_v46  ;;  %v1508_v46 = vld [vmem:[#allocation7 + $0x1e0] sm:$0xff]  ;;  %v1509_v51 = vld [vmem:[#allocation7 + $0x1e8] sm:$0xff] }
 0x36d   :  { %v868_v3 = vpop.xlane.xlu1 %867 }
 0x36e   :  { %v910_v9 = vrot.slane %v868_v3, %v3431_v14  ;;  %v906_v13 = vrot.slane %v868_v3, %v3428_v12  ;;  %v914_v15 = vrot.slane %v868_v3, %v3434_v16  ;;  %v918_v24 = vrot.slane %v868_v3, %v3472_v48 }
 0x36f   :  { %v922_v25 = vrot.slane %v868_v3, %v3475_v19  ;;  %v926_v26 = vrot.slane %v868_v3, %v3480_v49  ;;  %v930_v27 = vrot.slane %v868_v3, %v3485_v53  ;;  %v934_v28 = vrot.slane %v868_v3, %v3488_v54  ;;  %v1519_v3 = vld [vmem:[#allocation7 + $0x238] sm:$0xff] }
 0x370   :  { %3062 = vrcp.f32 %v910_v9  ;;  %v1534_v9 = vld [vmem:[#allocation7 + $0x2b0] sm:$0xff] }
 0x371   :  { %3064 = vrcp.f32 %v906_v13  ;;  %v2722_v13 = vpack.c.bf16 %v1519_v3, %v1518_v6  ;;  %v1510_v6 = vld [vmem:[#allocation7 + $0x1f0] sm:$0xff]  ;;  %v1511_v3 = vld [vmem:[#allocation7 + $0x1f8] sm:$0xff] }
 0x372   :  { %3066 = vrcp.f32 %v914_v15  ;;  %v1535_v15 = vld [vmem:[#allocation7 + $0x2b8] sm:$0xff] }
 0x373   :  { %3068 = vrcp.f32 %v918_v24  ;;  %v2752_v24 = vpack.c.bf16 %v1535_v15, %v1534_v9 }
 0x374   :  { %3070 = vrcp.f32 %v922_v25  ;;  %v1502_v25 = vld [vmem:[#allocation7 + $0x1b0] sm:$0xff] }
 0x375   :  { %3072 = vrcp.f32 %v926_v26  ;;  %v1503_v26 = vld [vmem:[#allocation7 + $0x1b8] sm:$0xff] }
 0x376   :  { %3074 = vrcp.f32 %v930_v27 }
 0x377   :  { %3076 = vrcp.f32 %v934_v28  ;;  %v2724_v28 = vpack.c.bf16 %v1503_v26, %v1502_v25 }
 0x37a   :  { %v3063_v29 = vpop.eup %3062 }
 0x37b   :  { %v3065_v30 = vpop.eup %3064  ;;  %v970_v32 = vmul.f32 %v3063_v29, %v3626_v60 }
 0x37c   :  { %v3067_v33 = vpop.eup %3066  ;;  %v968_v34 = vmul.f32 %v3065_v30, %v3624_v58  ;;  %v1514_v58 = vld [vmem:[#allocation7 + $0x210] sm:$0xff] }
 0x37d   :  { %v3069_v35 = vpop.eup %3068  ;;  %1030 = vperm.xlu1 %2933, %v970_v32   ;;  %v972_v36 = vmul.f32 %v3067_v33, %v3632_v61  ;;  %v2714_v61 = vpack.c.bf16 %v1515_v7, %v1514_v58  ;;  %v1538_v58 = vld [vmem:[#allocation7 + $0x2d0] sm:$0xff] }
 0x37e   :  { %1025 = vperm.xlu0 %2932, %v968_v34   ;;  %v3071_v1 = vpop.eup %3070  ;;  %v974_v4 = vmul.f32 %v3069_v35, %v3630_v55  ;;  %v2746_v55 = vpack.c.bf16 %v1531_v45, %v1530_v43  ;;  %v1520_v34 = vld [vmem:[#allocation7 + $0x240] sm:$0xff]  ;;  %v1521_v35 = vld [vmem:[#allocation7 + $0x248] sm:$0xff]  ;;  %v1539_v43 = vld [vmem:[#allocation7 + $0x2d8] sm:$0xff] }
 0x37f   :  { %v3073_v0 = vpop.eup %3072  ;;  %v976_v60 = vmul.f32 %v3071_v1, %v3638_v62  ;;  %2715 = vmatprep.subr.bf16.mxu0 %v2714_v61  ;;  %v1499_v62 = vld [vmem:[#allocation7 + $0x198] sm:$0xff]  ;;  %v2726_v1 = vpack.c.bf16 %v1521_v35, %v1520_v34  ;;  %v2758_v45 = vpack.c.bf16 %v1539_v43, %v1538_v58  ;;  %v3799_v58 = vld [vmem:[#allocation7 + $0x128] sm:$0xff] }
 0x380   :  { %v3075_v39 = vpop.eup %3074  ;;  %v978_v10 = vmul.f32 %v3073_v0, %v3636_v59  ;;  %2747 = vmatpush3.bf16.msra.mxu1 %v2746_v55  ;;  %v1498_v59 = vld [vmem:[#allocation7 + $0x190] sm:$0xff]  ;;  %v1504_v0 = vld [vmem:[#allocation7 + $0x1c0] sm:$0xff]  ;;  %v1507_v61 = vld [vmem:[#allocation7 + $0x1d8] sm:$0xff] }
 0x381   :  { %1035 = vperm.xlu1 %2933, %v972_v36   ;;  %v3077_v44 = vpop.eup %3076  ;;  %v980_v47 = vmul.f32 %v3075_v39, %v3644_v2  ;;  %2748 = vmatprep.subr.bf16.mxu1 %v4223_v56  ;;  %v2716_v31 = vpack.c.bf16 %v1499_v62, %v1498_v59  ;;  %v1501_v2 = vld [vmem:[#allocation7 + $0x1a8] sm:$0xff]  ;;  %v1536_v36 = vld [vmem:[#allocation7 + $0x2c0] sm:$0xff]  ;;  %v2728_v38 = vpack.c.bf16 %v1505_v37, %v1504_v0  ;;  %v1522_v39 = vld [vmem:[#allocation7 + $0x250] sm:$0xff] }
 0x382   :  { %1040 = vperm.xlu0 %2932, %v974_v4   ;;  %v982_v21 = vmul.f32 %v3077_v44, %v3642_v63  ;;  %v1500_v63 = vld [vmem:[#allocation7 + $0x1a0] sm:$0xff]  ;;  %v1537_v4 = vld [vmem:[#allocation7 + $0x2c8] sm:$0xff]  ;;  %v1506_v44 = vld [vmem:[#allocation7 + $0x1d0] sm:$0xff] }
 0x383   :  { %2717 = vmatpush3.bf16.msra.mxu0 %v2716_v31  ;;  %v2720_v5 = vpack.c.bf16 %v1501_v2, %v1500_v63  ;;  %v2755_v8 = vpack.c.bf16 %v1537_v4, %v1536_v36  ;;  %v2732_v55 = vpack.c.bf16 %v1507_v61, %v1506_v44  ;;  %v1540_v59 = vld [vmem:[#allocation7 + $0x2e0] sm:$0xff]  ;;  %v1541_v31 = vld [vmem:[#allocation7 + $0x2e8] sm:$0xff]  ;;  %v3805_v44 = vld [vmem:[#allocation7 + $0xb0] sm:$0xff] }
 0x384   :  { %2719 = vmatprep.subr.bf16.mxu0 %v2718_v23  ;;  %2750 = vmatpush3.bf16.msra.mxu1 %v2749_v57  ;;  %v2736_v23 = vpack.c.bf16 %v1509_v51, %v1508_v46  ;;  %v1542_v57 = vld [vmem:[#allocation7 + $0x2f0] sm:$0xff]  ;;  %v3773_v4 = vld [vmem:[#allocation7 + $0x100] sm:$0xff]  ;;  %v3775_v0 = vld [vmem:[#allocation7 + $0x108] sm:$0xff]  ;;  %4263 = vst [vmem:[#allocation20_spill] sm:$0xff] %v3805_v44 }
 0x385   :  { %1045 = vperm.xlu1 %2933, %v976_v60   ;;  %2751 = vmatprep.subr.bf16.mxu1 %v4223_v56  ;;  %v3777_v37 = vld [vmem:[#allocation7] sm:$0xff]  ;;  %v3803_v43 = vld [vmem:[#allocation7 + $0x28] sm:$0xff]  ;;  %v3807_v61 = vld [vmem:[#allocation7 + $0xb8] sm:$0xff] }
 0x386   :  { %1050 = vperm.xlu0 %2932, %v978_v10   ;;  %v1523_v10 = vld [vmem:[#allocation7 + $0x258] sm:$0xff]  ;;  %4264 = vst [vmem:[#allocation21_spill] sm:$0xff] %v3807_v61  ;;  %v3827_v46 = vld [vmem:[#allocation7 + $0x48] sm:$0xff] }
 0x387   :  { %2721 = vmatpush3.bf16.msra.mxu0 %v2720_v5  ;;  %v2730_v7 = vpack.c.bf16 %v1523_v10, %v1522_v39  ;;  %v1543_v5 = vld [vmem:[#allocation7 + $0x2f8] sm:$0xff]  ;;  %v3795_v39 = vld [vmem:[#allocation7 + $0xa8] sm:$0xff]  ;;  %v3797_v10 = vld [vmem:[#allocation7 + $0x120] sm:$0xff]  ;;  %4274 = vst [vmem:[#allocation31_spill] sm:$0xff] %v3827_v46 }
 0x388   :  { %2723 = vmatprep.subr.bf16.mxu0 %v2722_v13  ;;  %2753 = vmatpush3.bf16.msra.mxu1 %v2752_v24  ;;  %v2764_v15 = vpack.c.bf16 %v1543_v5, %v1542_v57  ;;  %v2740_v24 = vpack.c.bf16 %v1511_v3, %v1510_v6  ;;  %v3845_v5 = vld [vmem:[#allocation7 + $0x158] sm:$0xff]  ;;  %v3847_v6 = vld [vmem:[#allocation7 + $0x50] sm:$0xff] }
 0x389   :  { %1055 = vperm.xlu1 %2933, %v980_v47   ;;  %2754 = vmatprep.subr.bf16.mxu1 %v4223_v56  ;;  %v1524_v47 = vld [vmem:[#allocation7 + $0x260] sm:$0xff]  ;;  %4278 = vst [vmem:[#allocation35_spill] sm:$0xff] %v3845_v5  ;;  %4279 = vst [vmem:[#allocation36_spill] sm:$0xff] %v3847_v6  ;;  %v3849_v3 = vld [vmem:[#allocation7 + $0x58] sm:$0xff] }
 0x38a   :  { %1060 = vperm.xlu0 %2932, %v982_v21   ;;  %v1525_v21 = vld [vmem:[#allocation7 + $0x268] sm:$0xff]  ;;  %4280 = vst [vmem:[#allocation37_spill] sm:$0xff] %v3849_v3 }
 0x38b   :  { %2725 = vmatpush3.bf16.msra.mxu0 %v2724_v28  ;;  %v2734_v62 = vpack.c.bf16 %v1525_v21, %v1524_v47  ;;  %v3817_v47 = vld [vmem:[#allocation7 + $0xc0] sm:$0xff]  ;;  %v3819_v21 = vld [vmem:[#allocation7 + $0xc8] sm:$0xff] }
 0x38c   :  { %2727 = vmatprep.subr.bf16.mxu0 %v2726_v1  ;;  %2756 = vmatpush3.bf16.msra.mxu1 %v2755_v8  ;;  %v3781_v8 = vld [vmem:[#allocation7 + $0x90] sm:$0xff]  ;;  %4269 = vst [vmem:[#allocation26_spill] sm:$0xff] %v3817_v47  ;;  %4270 = vst [vmem:[#allocation27_spill] sm:$0xff] %v3819_v21 }
 0x38d   :  { %2757 = vmatprep.subr.bf16.mxu1 %v4223_v56 }
 0x38f   :  { %2729 = vmatpush3.bf16.msra.mxu0 %v2728_v38  ;;  %v3785_v38 = vld [vmem:[#allocation7 + $0x110] sm:$0xff] }
 0x390   :  { %2731 = vmatprep.subr.bf16.mxu0 %v2730_v7  ;;  %2759 = vmatpush3.bf16.msra.mxu1 %v2758_v45  ;;  %v3801_v7 = vld [vmem:[#allocation7 + $0x20] sm:$0xff]  ;;  %v3809_v45 = vld [vmem:[#allocation7 + $0x130] sm:$0xff] }
 0x391   :  { %2760 = vmatprep.subr.bf16.mxu1 %v4223_v56  ;;  %4262 = vst [vmem:[#allocation19_spill] sm:$0xff] %v3801_v7  ;;  %4265 = vst [vmem:[#allocation22_spill] sm:$0xff] %v3809_v45 }
 0x393   :  { %2733 = vmatpush3.bf16.msra.mxu0 %v2732_v55  ;;  %v3811_v55 = vld [vmem:[#allocation7 + $0x138] sm:$0xff] }
 0x394   :  { %2735 = vmatprep.subr.bf16.mxu0 %v2734_v62  ;;  %4266 = vst [vmem:[#allocation23_spill] sm:$0xff] %v3811_v55  ;;  %v3823_v62 = vld [vmem:[#allocation7 + $0x148] sm:$0xff] }
 0x395   :  { %4272 = vst [vmem:[#allocation29_spill] sm:$0xff] %v3823_v62 }
 0x397   :  { %2737 = vmatpush3.bf16.msra.mxu0 %v2736_v23  ;;  %v3833_v23 = vld [vmem:[#allocation7 + $0xd8] sm:$0xff] }
 0x398   :  { %4276 = vst [vmem:[#allocation33_spill] sm:$0xff] %v3833_v23 }
 0x3a1   :  { %v3741_v27 = vpop.xlane.xlu0 %864 }
 0x3a2   :  { %v878_v29 = vrot.slane %v3741_v27, %v3431_v14  ;;  %v874_v30 = vrot.slane %v3741_v27, %v3428_v12  ;;  %v886_v32 = vrot.slane %v3741_v27, %v3472_v48  ;;  %v882_v33 = vrot.slane %v3741_v27, %v3434_v16 }
 0x3a3   :  { %v894_v60 = vrot.slane %v3741_v27, %v3480_v49  ;;  %v890_v48 = vrot.slane %v3741_v27, %v3475_v19  ;;  %v902_v49 = vrot.slane %v3741_v27, %v3488_v54  ;;  %v898_v19 = vrot.slane %v3741_v27, %v3485_v53  ;;  %v1527_v53 = vld [vmem:[#allocation7 + $0x278] sm:$0xff] }
 0x3a4   :  { %3078 = vrcp.f32 %v878_v29  ;;  %v2761_v54 = vpack.c.bf16 %v1541_v31, %v1540_v59  ;;  %v2738_v2 = vpack.c.bf16 %v1527_v53, %v1526_v52  ;;  %v3821_v59 = vld [vmem:[#allocation7 + $0x140] sm:$0xff]  ;;  %v3835_v52 = vld [vmem:[#allocation7 + $0x150] sm:$0xff] }
 0x3a5   :  { %3080 = vrcp.f32 %v874_v30  ;;  %4271 = vst [vmem:[#allocation28_spill] sm:$0xff] %v3821_v59  ;;  %v3825_v31 = vld [vmem:[#allocation7 + $0x40] sm:$0xff]  ;;  %4277 = vst [vmem:[#allocation34_spill] sm:$0xff] %v3835_v52 }
 0x3a6   :  { %3082 = vrcp.f32 %v886_v32  ;;  %2762 = vmatpush3.bf16.msra.mxu1 %v2761_v54  ;;  %2739 = vmatprep.subr.bf16.mxu0 %v2738_v2  ;;  %v1463_v32 = vld [vmem:[#allocation7 + $0x80] sm:$0xff]  ;;  %4273 = vst [vmem:[#allocation30_spill] sm:$0xff] %v3825_v31  ;;  %v3831_v54 = vld [vmem:[#allocation7 + $0xd0] sm:$0xff] }
 0x3a7   :  { %3084 = vrcp.f32 %v882_v33  ;;  %2763 = vmatprep.subr.bf16.mxu1 %v4223_v56  ;;  %2741 = vmatpush3.bf16.msra.mxu0 %v2740_v24  ;;  %4275 = vst [vmem:[#allocation32_spill] sm:$0xff] %v3831_v54 }
 0x3a8   :  { %3086 = vrcp.f32 %v894_v60  ;;  %v3787_v60 = vld [vmem:[#allocation7 + $0x118] sm:$0xff] }
 0x3a9   :  { %3088 = vrcp.f32 %v890_v48  ;;  %v3793_v48 = vld [vmem:[#allocation7 + $0xa0] sm:$0xff] }
 0x3aa   :  { %3090 = vrcp.f32 %v902_v49  ;;  %2765 = vmatpush3.bf16.msra.mxu1 %v2764_v15  ;;  %v3813_v49 = vld [vmem:[#allocation7 + $0x30] sm:$0xff] }
 0x3ab   :  { %3092 = vrcp.f32 %v898_v19  ;;  %2798 = vmatprep.subr.bf16.mxu1 %v4223_v56  ;;  %4267 = vst [vmem:[#allocation24_spill] sm:$0xff] %v3813_v49  ;;  %v3815_v19 = vld [vmem:[#allocation7 + $0x38] sm:$0xff]  ;;  %v3889_v15 = vld [vmem:[#allocation7 + $0xf0] sm:$0xff] }
 0x3ac   :  { %4268 = vst [vmem:[#allocation25_spill] sm:$0xff] %v3815_v19  ;;  %4287 = vst [vmem:[#allocation44_spill] sm:$0xff] %v3889_v15  ;;  %v3901_v15 = vld [vmem:[#allocation7 + $0x178] sm:$0xff] }
 0x3ad   :  { %4290 = vst [vmem:[#allocation47_spill] sm:$0xff] %v3901_v15 }
 0x3ae   :  { %v3079_v63 = vpop.eup %3078 }
 0x3af   :  { %v3081_v9 = vpop.eup %3080  ;;  %v954_v13 = vmul.f32 %v3079_v63, %v3666_v40  ;;  %v3099_v63 = vld [vmem:[#allocation2 + $0xd0] sm:$0xff] }
 0x3b0   :  { %v3083_v25 = vpop.eup %3082  ;;  %v952_v26 = vmul.f32 %v3081_v9, %v3664_v18  ;;  %v1464_v18 = vld [vmem:[#allocation7 + $0x88] sm:$0xff]  ;;  %v3098_v9 = vld [vmem:[#allocation2 + $0xc8] sm:$0xff] }
 0x3b1   :  { %v3085_v27 = vpop.eup %3084  ;;  %990 = vperm.xlu0 %2932, %v954_v13   ;;  %v958_v28 = vmul.f32 %v3083_v25, %v3672_v17  ;;  %v2766_v34 = vpack.c.bf16 %v1464_v18, %v1463_v32  ;;  %v3859_v25 = vld [vmem:[#allocation7 + $0xe0] sm:$0xff]  ;;  %v3873_v32 = vld [vmem:[#allocation7 + $0x168] sm:$0xff]  ;;  %v3097_v13 = vld [vmem:[#allocation2 + $0xc0] sm:$0xff] }
 0x3b2   :  { %985 = vperm.xlu1 %2933, %v952_v26   ;;  %v3087_v29 = vpop.eup %3086  ;;  %v956_v40 = vmul.f32 %v3085_v27, %v3670_v11  ;;  %4281 = vst [vmem:[#allocation38_spill] sm:$0xff] %v3859_v25  ;;  %v3861_v26 = vld [vmem:[#allocation7 + $0xe8] sm:$0xff]  ;;  %4284 = vst [vmem:[#allocation41_spill] sm:$0xff] %v3873_v32  ;;  %v3096_v27 = vld [vmem:[#allocation2 + $0xe8] sm:$0xff] }
 0x3b3   :  { %v3089_v30 = vpop.eup %3088  ;;  %v962_v33 = vmul.f32 %v3087_v29, %v3678_v20  ;;  %2767 = vmatprep.subr.bf16.mxu0 %v2766_v34  ;;  %v3779_v20 = vld [vmem:[#allocation7 + $0x8] sm:$0xff]  ;;  %4282 = vst [vmem:[#allocation39_spill] sm:$0xff] %v3861_v26  ;;  %v3095_v29 = vld [vmem:[#allocation2 + $0xe0] sm:$0xff]  ;;  %v3101_v32 = vld [vmem:[#allocation2 + $0xf8] sm:$0xff] }
 0x3b4   :  { %v3091_v35 = vpop.eup %3090  ;;  %v960_v36 = vmul.f32 %v3089_v30, %v3676_v22  ;;  %v3783_v22 = vld [vmem:[#allocation7 + $0x98] sm:$0xff]  ;;  %v3871_v30 = vld [vmem:[#allocation7 + $0x160] sm:$0xff] }
 0x3b5   :  { %1000 = vperm.xlu0 %2932, %v958_v28   ;;  %v3093_v1 = vpop.eup %3092  ;;  %v966_v17 = vmul.f32 %v3091_v35, %v3684_v42  ;;  %v3789_v42 = vld [vmem:[#allocation7 + $0x10] sm:$0xff]  ;;  %4283 = vst [vmem:[#allocation40_spill] sm:$0xff] %v3871_v30  ;;  %v3891_v35 = vld [vmem:[#allocation7 + $0xf8] sm:$0xff] }
 0x3b6   :  { %995 = vperm.xlu1 %2933, %v956_v40   ;;  %v964_v11 = vmul.f32 %v3093_v1, %v3682_v41  ;;  %v3791_v41 = vld [vmem:[#allocation7 + $0x18] sm:$0xff]  ;;  %v3883_v1 = vld [vmem:[#allocation7 + $0x60] sm:$0xff]  ;;  %4288 = vst [vmem:[#allocation45_spill] sm:$0xff] %v3891_v35 }
 0x3b7   :  { %4285 = vst [vmem:[#allocation42_spill] sm:$0xff] %v3883_v1  ;;  %v3102_v1 = vld [vmem:[#allocation2 + $0x100] sm:$0xff] }
 0x3b9   :  { %1010 = vperm.xlu0 %2932, %v962_v33  }
 0x3ba   :  { %1005 = vperm.xlu1 %2933, %v960_v36  }
 0x3bd   :  { %1020 = vperm.xlu0 %2932, %v966_v17   ;;  %v3885_v17 = vld [vmem:[#allocation7 + $0x68] sm:$0xff] }
 0x3be   :  { %1015 = vperm.xlu1 %2933, %v964_v11   ;;  %4286 = vst [vmem:[#allocation43_spill] sm:$0xff] %v3885_v17  ;;  %v3094_v11 = vld [vmem:[#allocation2 + $0xd8] sm:$0xff] }
 0x3fc   :  { %v1031_v18 = vpop.permute.xlu1 %1030 }
 0x3fd   :  { %v1090_v40 = vmul.f32 %v3094_v11, %v1031_v18  ;;  %v1091_v28 = vmul.f32 %v3095_v29, %v1031_v18  ;;  %v1092_v24 = vmul.f32 %v3096_v27, %v1031_v18  ;;  %v1026_v33 = vpop.permute.xlu0 %1025 }
 0x3fe   :  { %v1087_v36 = vmul.f32 %v3097_v13, %v1026_v33  ;;  %v1088_v2 = vmul.f32 %v3098_v9, %v1026_v33  ;;  %v1089_v57 = vmul.f32 %v3099_v63, %v1026_v33  ;;  %v3100_v63 = vld [vmem:[#allocation2 + $0xf0] sm:$0xff] }
 0x3ff   :  { %v1273_v29 = vrot.slane %v1090_v40, 4  ;;  %v1279_v53 = vrot.slane %v1091_v28, 4  ;;  %v1285_v27 = vrot.slane %v1092_v24, 4 }
 0x400   :  { %v1255_v34 = vrot.slane %v1087_v36, 4  ;;  %v1261_v56 = vrot.slane %v1088_v2, 4  ;;  %v1267_v50 = vrot.slane %v1089_v57, 4  ;;  %v1036_v51 = vpop.permute.xlu1 %1035 }
 0x401   :  { %v1274_v16 = vadd.f32 %v1273_v29, %v1090_v40  ;;  %v1280_v9 = vadd.f32 %v1279_v53, %v1091_v28  ;;  %v1286_v14 = vadd.f32 %v1285_v27, %v1092_v24  ;;  %v1093_v33 = vmul.f32 %v3100_v63, %v1036_v51 }
 0x402   :  { %v1256_v12 = vadd.f32 %v1255_v34, %v1087_v36  ;;  %v1262_v11 = vadd.f32 %v1261_v56, %v1088_v2  ;;  %v1268_v30 = vadd.f32 %v1267_v50, %v1089_v57  ;;  %v1094_v25 = vmul.f32 %v3101_v32, %v1036_v51 }
 0x403   :  { %v1275_v26 = vrot.slane %v1274_v16, 2  ;;  %v1281_v6 = vrot.slane %v1280_v9, 2  ;;  %v1287_v18 = vrot.slane %v1286_v14, 2  ;;  %v1095_v17 = vmul.f32 %v3102_v1, %v1036_v51  ;;  %v3899_v1 = vld [vmem:[#allocation7 + $0x170] sm:$0xff] }
 0x404   :  { %v1257_v3 = vrot.slane %v1256_v12, 2  ;;  %v1263_v52 = vrot.slane %v1262_v11, 2  ;;  %v1269_v5 = vrot.slane %v1268_v30, 2  ;;  %v1291_v54 = vrot.slane %v1093_v33, 4  ;;  %4289 = vst [vmem:[#allocation46_spill] sm:$0xff] %v3899_v1 }
 0x405   :  { %v1276_v13 = vadd.f32 %v1275_v26, %v1274_v16  ;;  %v1282_v40 = vadd.f32 %v1281_v6, %v1280_v9  ;;  %v1288_v53 = vadd.f32 %v1287_v18, %v1286_v14  ;;  %v1297_v24 = vrot.slane %v1094_v25, 4  ;;  %v1041_v26 = vpop.permute.xlu0 %1040 }
 0x406   :  { %v1258_v28 = vadd.f32 %v1257_v3, %v1256_v12  ;;  %v1264_v29 = vadd.f32 %v1263_v52, %v1262_v11  ;;  %v1270_v34 = vadd.f32 %v1269_v5, %v1268_v30  ;;  %v1292_v56 = vadd.f32 %v1291_v54, %v1093_v33 }
 0x407   :  { %v1277_v50 = vrot.slane %v1276_v13, 1  ;;  %v1283_v57 = vrot.slane %v1282_v40, 1  ;;  %v1289_v2 = vrot.slane %v1288_v53, 1  ;;  %v1298_v32 = vadd.f32 %v1297_v24, %v1094_v25 }
 0x408   :  { %v1259_v36 = vrot.slane %v1258_v28, 1  ;;  %v1265_v27 = vrot.slane %v1264_v29, 1  ;;  %v1271_v63 = vrot.slane %v1270_v34, 1  ;;  %v1293_v51 = vrot.slane %v1292_v56, 2 }
 0x409   :  { %v1278_v16 = vadd.f32 %v1277_v50, %v1276_v13  ;;  %v3903_v6 = vadd.f32 %v1283_v57, %v1282_v40  ;;  %v1290_v14 = vadd.f32 %v1289_v2, %v1288_v53  ;;  %v1299_v12 = vrot.slane %v1298_v32, 2  ;;  %v3103_v50 = vld [vmem:[#allocation2 + $0x108] sm:$0xff] }
 0x40a   :  { %v1260_v52 = vadd.f32 %v1259_v36, %v1258_v28  ;;  %v3905_v5 = vadd.f32 %v1265_v27, %v1264_v29  ;;  %v1272_v54 = vadd.f32 %v1271_v63, %v1270_v34  ;;  %v1294_v3 = vadd.f32 %v1293_v51, %v1292_v56  ;;  %v3104_v29 = vld [vmem:[#allocation2 + $0x110] sm:$0xff]  ;;  %v1046_v34 = vpop.permute.xlu1 %1045  ;;  %v3105_v36 = vld [vmem:[#allocation2 + $0x118] sm:$0xff] }
 0x40b   :  { %v1426_v25 = vmax.f32 %v1278_v16, 0.0  ;;  %v1300_v11 = vadd.f32 %v1299_v12, %v1298_v32  ;;  %v1428_v9 = vmax.f32 %v1290_v14, 0.0  ;;  %v1303_v53 = vrot.slane %v1095_v17, 4 }
 0x40c   :  { %v1423_v33 = vmax.f32 %v1260_v52, 0.0  ;;  %v1425_v13 = vmax.f32 %v1272_v54, 0.0  ;;  %v1295_v40 = vrot.slane %v1294_v3, 1  ;;  %v1096_v28 = vmul.f32 %v3103_v50, %v1041_v26  ;;  %v3106_v54 = vld [vmem:[#allocation2 + $0x120] sm:$0xff] }
 0x40d   :  { %v1301_v24 = vrot.slane %v1300_v11, 1  ;;  %v1097_v57 = vmul.f32 %v3104_v29, %v1041_v26  ;;  %v1098_v27 = vmul.f32 %v3105_v36, %v1041_v26  ;;  %v1304_v51 = vadd.f32 %v1303_v53, %v1095_v17  ;;  %v3107_v29 = vld [vmem:[#allocation2 + $0x128] sm:$0xff]  ;;  %v3108_v26 = vld [vmem:[#allocation2 + $0x130] sm:$0xff]  ;;  %v1051_v53 = vpop.permute.xlu0 %1050 }
 0x40e   :  { %v3912_v2 = vsel %vm559_vm0, %v1426_v25, %v1423_v33  ;;  %v3914_v32 = vadd.f32 %v1295_v40, %v1294_v3  ;;  %v1309_v16 = vrot.slane %v1096_v28, 4  ;;  %v3919_v12 = vsel %vm559_vm0, %v1428_v9, %v1425_v13 }
 0x40f   :  { %v3916_v63 = vadd.f32 %v1301_v24, %v1300_v11  ;;  %v1315_v14 = vrot.slane %v1097_v57, 4  ;;  %v1321_v52 = vrot.slane %v1098_v27, 4  ;;  %v1099_v50 = vmul.f32 %v3106_v54, %v1046_v34 }
 0x410   :  { %v1100_v18 = vmul.f32 %v3107_v29, %v1046_v34  ;;  %v1305_v30 = vrot.slane %v1304_v51, 2  ;;  %v1310_v3 = vadd.f32 %v1309_v16, %v1096_v28  ;;  %v1101_v11 = vmul.f32 %v3108_v26, %v1046_v34  ;;  %v3109_v28 = vld [vmem:[#allocation2 + $0x138] sm:$0xff]  ;;  %v3110_v26 = vld [vmem:[#allocation2 + $0x140] sm:$0xff] }
 0x411   :  { %v1316_v33 = vadd.f32 %v1315_v14, %v1097_v57  ;;  %v1322_v40 = vadd.f32 %v1321_v52, %v1098_v27  ;;  %v1327_v24 = vrot.slane %v1099_v50, 4  ;;  %v1102_v57 = vmul.f32 %v3109_v28, %v1051_v53 }
 0x412   :  { %v1333_v17 = vrot.slane %v1100_v18, 4  ;;  %v1306_v36 = vadd.f32 %v1305_v30, %v1304_v51  ;;  %v1311_v13 = vrot.slane %v1310_v3, 2  ;;  %v1339_v29 = vrot.slane %v1101_v11, 4 }
 0x413   :  { %v1317_v56 = vrot.slane %v1316_v33, 2  ;;  %v1323_v1 = vrot.slane %v1322_v40, 2  ;;  %v1328_v54 = vadd.f32 %v1327_v24, %v1099_v50  ;;  %v1103_v9 = vmul.f32 %v3110_v26, %v1051_v53 }
 0x414   :  { %v1334_v15 = vadd.f32 %v1333_v17, %v1100_v18  ;;  %v1307_v35 = vrot.slane %v1306_v36, 1  ;;  %v1312_v23 = vadd.f32 %v1311_v13, %v1310_v3  ;;  %v1340_v14 = vadd.f32 %v1339_v29, %v1101_v11 }
 0x415   :  { %v1318_v25 = vadd.f32 %v1317_v56, %v1316_v33  ;;  %v1324_v27 = vadd.f32 %v1323_v1, %v1322_v40  ;;  %v1329_v16 = vrot.slane %v1328_v54, 2  ;;  %v3111_v56 = vld [vmem:[#allocation2 + $0x148] sm:$0xff]  ;;  %v1345_v1 = vrot.slane %v1102_v57, 4 }
 0x416   :  { %v1335_v34 = vrot.slane %v1334_v15, 2  ;;  %v3923_v52 = vadd.f32 %v1307_v35, %v1306_v36  ;;  %v1313_v30 = vrot.slane %v1312_v23, 1  ;;  %v1341_v18 = vrot.slane %v1340_v14, 2  ;;  %v1056_v36 = vpop.permute.xlu1 %1055 }
 0x417   :  { %v1319_v51 = vrot.slane %v1318_v25, 1  ;;  %v1325_v31 = vrot.slane %v1324_v27, 1  ;;  %v1330_v46 = vadd.f32 %v1329_v16, %v1328_v54  ;;  %v1104_v33 = vmul.f32 %v3111_v56, %v1051_v53 }
 0x418   :  { %v1336_v50 = vadd.f32 %v1335_v34, %v1334_v15  ;;  %v3925_v24 = vadd.f32 %v1313_v30, %v1312_v23  ;;  %v1342_v17 = vadd.f32 %v1341_v18, %v1340_v14  ;;  %v1346_v54 = vadd.f32 %v1345_v1, %v1102_v57  ;;  %v3112_v34 = vld [vmem:[#allocation2 + $0x150] sm:$0xff]  ;;  %v1061_v14 = vpop.permute.xlu0 %1060  ;;  %v3113_v18 = vld [vmem:[#allocation2 + $0x158] sm:$0xff]  ;;  %v3115_v23 = vld [vmem:[#allocation2 + $0x168] sm:$0xff] }
 0x419   :  { %v3927_v3 = vadd.f32 %v1319_v51, %v1318_v25  ;;  %v3929_v40 = vadd.f32 %v1325_v31, %v1324_v27  ;;  %v1331_v11 = vrot.slane %v1330_v46, 1  ;;  %v1351_v15 = vrot.slane %v1103_v9, 4  ;;  %v3116_v57 = vld [vmem:[#allocation2 + $0x170] sm:$0xff] }
 0x41a   :  { %v1337_v35 = vrot.slane %v1336_v50, 1  ;;  %v1343_v53 = vrot.slane %v1342_v17, 1  ;;  %v1347_v16 = vrot.slane %v1346_v54, 2  ;;  %v1357_v27 = vrot.slane %v1104_v33, 4 }
 0x41b   :  { %v3934_v28 = vadd.f32 %v1331_v11, %v1330_v46  ;;  %v1352_v31 = vadd.f32 %v1351_v15, %v1103_v9  ;;  %v1105_v30 = vmul.f32 %v3112_v34, %v1056_v36  ;;  %v1106_v56 = vmul.f32 %v3113_v18, %v1056_v36  ;;  %v3117_v18 = vld [vmem:[#allocation2 + $0x178] sm:$0xff] }
 0x41c   :  { %v3936_v25 = vadd.f32 %v1337_v35, %v1336_v50  ;;  %v3939_v26 = vadd.f32 %v1343_v53, %v1342_v17  ;;  %v1348_v1 = vadd.f32 %v1347_v16, %v1346_v54  ;;  %v1358_v11 = vadd.f32 %v1357_v27, %v1104_v33  ;;  %v3114_v50 = vld [vmem:[#allocation2 + $0x160] sm:$0xff] }
 0x41d   :  { %v1353_v46 = vrot.slane %v1352_v31, 2  ;;  %v1107_v35 = vmul.f32 %v3114_v50, %v1056_v36  ;;  %v1363_v9 = vrot.slane %v1105_v30, 4  ;;  %v1369_v15 = vrot.slane %v1106_v56, 4 }
 0x41e   :  { %v1436_v29 = vmax.f32 %v3936_v25, 0.0  ;;  %v1108_v34 = vmul.f32 %v3115_v23, %v1061_v14  ;;  %v1349_v13 = vrot.slane %v1348_v1, 1  ;;  %v1359_v51 = vrot.slane %v1358_v11, 2 }
 0x41f   :  { %v1354_v59 = vadd.f32 %v1353_v46, %v1352_v31  ;;  %v1375_v17 = vrot.slane %v1107_v35, 4  ;;  %v1364_v53 = vadd.f32 %v1363_v9, %v1105_v30  ;;  %v1370_v62 = vadd.f32 %v1369_v15, %v1106_v56 }
 0x420   :  { %v1109_v47 = vmul.f32 %v3116_v57, %v1061_v14  ;;  %v1110_v54 = vmul.f32 %v3117_v18, %v1061_v14  ;;  %v1437_v33 = vmax.f32 %v3939_v26, 0.0  ;;  %v1360_v36 = vadd.f32 %v1359_v51, %v1358_v11 }
 0x421   :  { %v1355_v16 = vrot.slane %v1354_v59, 1  ;;  %v1376_v27 = vadd.f32 %v1375_v17, %v1107_v35  ;;  %v1365_v25 = vrot.slane %v1364_v53, 2  ;;  %v1371_v50 = vrot.slane %v1370_v62, 2 }
 0x422   :  { %v1381_v21 = vrot.slane %v1108_v34, 4  ;;  %v1387_v49 = vrot.slane %v1109_v47, 4  ;;  %v3944_v23 = vadd.f32 %v1349_v13, %v1348_v1  ;;  %v1361_v31 = vrot.slane %v1360_v36, 1 }
 0x423   :  { %v1377_v46 = vrot.slane %v1376_v27, 2  ;;  %v1393_v19 = vrot.slane %v1110_v54, 4  ;;  %v1366_v30 = vadd.f32 %v1365_v25, %v1364_v53  ;;  %v1372_v56 = vadd.f32 %v1371_v50, %v1370_v62 }
 0x424   :  { %v1382_v9 = vadd.f32 %v1381_v21, %v1108_v34  ;;  %v1388_v57 = vadd.f32 %v1387_v49, %v1109_v47  ;;  %v1362_v15 = vadd.f32 %v1361_v31, %v1360_v36  ;;  %v1356_v26 = vadd.f32 %v1355_v16, %v1354_v59 }
 0x425   :  { %v1378_v14 = vadd.f32 %v1377_v46, %v1376_v27  ;;  %v1394_v18 = vadd.f32 %v1393_v19, %v1110_v54  ;;  %v1367_v45 = vrot.slane %v1366_v30, 1  ;;  %v1373_v35 = vrot.slane %v1372_v56, 1 }
 0x426   :  { %v1383_v51 = vrot.slane %v1382_v9, 2  ;;  %v1389_v11 = vrot.slane %v1388_v57, 2  ;;  %v1440_v17 = vmax.f32 %v1362_v15, 0.0  ;;  %v1439_v13 = vmax.f32 %v1356_v26, 0.0  ;;  %v3118_v26 = vld [vmem:[#allocation2 + $0x18] sm:$0xff] }
 0x427   :  { %v1379_v55 = vrot.slane %v1378_v14, 1  ;;  %v1395_v44 = vrot.slane %v1394_v18, 2  ;;  %v1374_v61 = vadd.f32 %v1373_v35, %v1372_v56  ;;  %v4291_v53 = vmax.f32 %v3905_v5, 0.0 }
 0x428   :  { %v1384_v1 = vadd.f32 %v1383_v51, %v1382_v9  ;;  %v1390_v7 = vadd.f32 %v1389_v11, %v1388_v57  ;;  %v4292_v21 = vmax.f32 %v3903_v6, 0.0  ;;  %v4293_v19 = vmax.f32 %v3916_v63, 0.0 }
 0x429   :  { %v1396_v47 = vadd.f32 %v1395_v44, %v1394_v18  ;;  %v1380_v62 = vadd.f32 %v1379_v55, %v1378_v14  ;;  %v4294_v34 = vmax.f32 %v3923_v52, 0.0  ;;  %v1442_v36 = vmax.f32 %v1374_v61, 0.0 }
 0x42a   :  { %v1575_v49 = vsel %vm559_vm0, %v4292_v21, %v4291_v53  ;;  %v1391_v16 = vrot.slane %v1390_v7, 1  ;;  %v4295_v27 = vmax.f32 %v3927_v3, 0.0  ;;  %v4296_v6 = vmax.f32 %v3929_v40, 0.0  ;;  %v3120_v53 = vld [vmem:[#allocation2 + $0x8] sm:$0xff] }
 0x42b   :  { %v1576_v59 = vsel %vm561_vm1, %v4293_v19, %v1575_v49  ;;  %v1583_v54 = vsel %vm561_vm1, %v4294_v34, %v3919_v12  ;;  %v1397_v25 = vrot.slane %v1396_v47, 1  ;;  %v1443_v50 = vmax.f32 %v1380_v62, 0.0  ;;  %v3121_v49 = vld [vmem:[#allocation2 + $0x10] sm:$0xff] }
 0x42c   :  { %v1577_v5 = vsel %vm563_vm2, %v4295_v27, %v1576_v59  ;;  %v1584_v44 = vsel %vm563_vm2, %v4296_v6, %v1583_v54  ;;  %v1438_v52 = vmax.f32 %v3944_v23, 0.0  ;;  %v1392_v31 = vadd.f32 %v1391_v16, %v1390_v7  ;;  %v3123_v27 = vld [vmem:[#allocation2 + $0x28] sm:$0xff] }
 0x42d   :  { %v1578_v63 = vsel %vm565_vm3, %v1436_v29, %v1577_v5  ;;  %v1585_v55 = vsel %vm565_vm3, %v1437_v33, %v1584_v44  ;;  %v1368_v61 = vadd.f32 %v1367_v45, %v1366_v30  ;;  %v1398_v46 = vadd.f32 %v1397_v25, %v1396_v47 }
 0x42e   :  { %v1579_v12 = vsel %vm567_vm4, %v1439_v13, %v1578_v63  ;;  %v1586_v56 = vsel %vm567_vm4, %v1440_v17, %v1585_v55  ;;  %v1385_v40 = vrot.slane %v1384_v1, 1  ;;  %v1445_v9 = vmax.f32 %v1392_v31, 0.0  ;;  %v3119_v13 = vld [vmem:[#allocation2] sm:$0xff]  ;;  %v3124_v31 = vld [vmem:[#allocation2 + $0x30] sm:$0xff] }
 0x42f   :  { %v1580_v3 = vsel %vm569_vm5, %v1442_v36, %v1579_v12  ;;  %v1587_v57 = vsel %vm569_vm5, %v1443_v50, %v1586_v56  ;;  %v1441_v29 = vmax.f32 %v1368_v61, 0.0  ;;  %v4297_v15 = vmax.f32 %v3914_v32, 0.0 }
 0x430   :  { %v991_v23 = vpop.permute.xlu0 %990  ;;  %v1446_v7 = vmax.f32 %v1398_v46, 0.0  ;;  %v1386_v14 = vadd.f32 %v1385_v40, %v1384_v1  ;;  %v4298_v45 = vmax.f32 %v3925_v24, 0.0  ;;  %v1581_v11 = vsel %vm571_vm6, %v1445_v9, %v1580_v3 }
 0x431   :  { %v1569_v33 = vsel %vm561_vm1, %v4297_v15, %v3912_v2  ;;  %v986_v18 = vpop.permute.xlu1 %985  ;;  %v1066_v51 = vmul.f32 %v3118_v26, %v991_v23  ;;  %v4299_v35 = vmax.f32 %v3934_v28, 0.0  ;;  %1656 = vmatprep.mubr.f32.mxu0 %v1581_v11  ;;  %v3122_v28 = vld [vmem:[#allocation2 + $0x20] sm:$0xff]  ;;  %v4300_v36 = vpack.c.bf16 %v3775_v0, %v3773_v4  ;;  %v3125_v0 = vld [vmem:[#allocation2 + $0x38] sm:$0xff] }
 0x432   :  { %v1570_v30 = vsel %vm563_vm2, %v4298_v45, %v1569_v33  ;;  %v1063_v32 = vmul.f32 %v3119_v13, %v986_v18  ;;  %v1064_v2 = vmul.f32 %v3120_v53, %v986_v18  ;;  %v1588_v1 = vsel %vm571_vm6, %v1446_v7, %v1587_v57 }
 0x433   :  { %v1571_v17 = vsel %vm565_vm3, %v4299_v35, %v1570_v30  ;;  %v1444_v21 = vmax.f32 %v1386_v14, 0.0  ;;  %v1065_v47 = vmul.f32 %v3121_v49, %v986_v18  ;;  %2533 = vmatmul.mubr.f32.vlgmr.msra.gmra.mrb[0].mxu1 %v1588_v1  ;;  %v1067_v34 = vmul.f32 %v3122_v28, %v991_v23 }
 0x434   :  { %v1572_v24 = vsel %vm567_vm4, %v1438_v52, %v1571_v17  ;;  %v1111_v59 = vrot.slane %v1063_v32, 4  ;;  %v1117_v62 = vrot.slane %v1064_v2, 4  ;;  %2800 = vmatpush3.bf16.msra.mxu1 %v4300_v36  ;;  %v1068_v5 = vmul.f32 %v3123_v27, %v991_v23  ;;  %v4312_v27 = vld [vmem:[#allocation20_spill] sm:$0xff] }
 0x435   :  { %v1573_v19 = vsel %vm569_vm5, %v1441_v29, %v1572_v24  ;;  %v1123_v16 = vrot.slane %v1065_v47, 4  ;;  %v1129_v6 = vrot.slane %v1066_v51, 4  ;;  %v996_v44 = vpop.permute.xlu1 %995  ;;  %v4301_v63 = vmov 0.0   ;;  %v3126_v29 = vld [vmem:[#allocation2 + $0x40] sm:$0xff] }
 0x436   :  { %v1574_v54 = vsel %vm571_vm6, %v1444_v21, %v1573_v19  ;;  %2567 = vmatprep.mubr.msk.f32.mxu1 %vm3293_vm8, %v4301_v63  ;;  %v1112_v25 = vadd.f32 %v1111_v59, %v1063_v32  ;;  %v1118_v50 = vadd.f32 %v1117_v62, %v1064_v2  ;;  %v1135_v55 = vrot.slane %v1067_v34, 4 }
 0x437   :  { %1657 = vmatmul.mubr.f32.vlgmr.msra.gmra.mrb[0].mxu0 %v1574_v54  ;;  %v4302_v52 = vmov 0.0|0.0   ;;  %v1069_v12 = vmul.f32 %v3124_v31, %v996_v44  ;;  %v1124_v61 = vadd.f32 %v1123_v16, %v1065_v47  ;;  %v1130_v3 = vadd.f32 %v1129_v6, %v1066_v51  ;;  %v4020_v6 = vld [vmem:[#allocation7 + $0x70] sm:$0xff] }
 0x438   :  { %2801 = vmatprep.subr.bf16.mxu1 %v4302_v52  ;;  %v1141_v46 = vrot.slane %v1068_v5, 4  ;;  %v4303_v4 = vpack.c.bf16 %v3779_v20, %v3777_v37  ;;  %v1070_v56 = vmul.f32 %v3125_v0, %v996_v44  ;;  %v1113_v40 = vrot.slane %v1112_v25, 2  ;;  %v3127_v0 = vld [vmem:[#allocation2 + $0x48] sm:$0xff] }
 0x439   :  { %v1119_v9 = vrot.slane %v1118_v50, 2  ;;  %v1136_v57 = vadd.f32 %v1135_v55, %v1067_v34  ;;  %v3995_v15 = vmul.f32 %v3126_v29, %v996_v44  ;;  %v4304_v33 = vpack.c.bf16 %v3783_v22, %v3781_v8  ;;  %v4022_v44 = vld [vmem:[#allocation7 + $0x78] sm:$0xff] }
 0x43a   :  { %2769 = vmatpush3.bf16.msra.mxu0 %v4303_v4  ;;  %v1125_v23 = vrot.slane %v1124_v61, 2  ;;  %v1131_v7 = vrot.slane %v1130_v3, 2  ;;  %v1142_v14 = vadd.f32 %v1141_v46, %v1068_v5  ;;  %v1147_v45 = vrot.slane %v1069_v12, 4 }
 0x43b   :  { %2771 = vmatprep.subr.bf16.mxu0 %v4304_v33  ;;  %v4305_v37 = vpack.c.bf16 %v3787_v60, %v3785_v38  ;;  %v1114_v20 = vadd.f32 %v1113_v40, %v1112_v25  ;;  %v1120_v30 = vadd.f32 %v1119_v9, %v1118_v50  ;;  %v1137_v18 = vrot.slane %v1136_v57, 2  ;;  %v1006_v33 = vpop.permute.xlu1 %1005 }
 0x43c   :  { %v1153_v26 = vrot.slane %v1070_v56, 4  ;;  %v1126_v51 = vadd.f32 %v1125_v23, %v1124_v61  ;;  %v1132_v11 = vadd.f32 %v1131_v7, %v1130_v3  ;;  %v1143_v35 = vrot.slane %v1142_v14, 2  ;;  %v4315_v61 = vld [vmem:[#allocation22_spill] sm:$0xff]  ;;  %v4317_v23 = vld [vmem:[#allocation25_spill] sm:$0xff]  ;;  %v4318_v7 = vld [vmem:[#allocation24_spill] sm:$0xff] }
 0x43d   :  { %2803 = vmatpush3.bf16.msra.mxu1 %v4305_v37  ;;  %v1148_v17 = vadd.f32 %v1147_v45, %v1069_v12  ;;  %v4306_v8 = vpack.c.bf16 %v3791_v41, %v3789_v42  ;;  %v1115_v22 = vrot.slane %v1114_v20, 1  ;;  %v1121_v13 = vrot.slane %v1120_v30, 1  ;;  %v4314_v12 = vld [vmem:[#allocation23_spill] sm:$0xff] }
 0x43e   :  { %2804 = vmatprep.subr.bf16.mxu1 %v4302_v52  ;;  %v1138_v32 = vadd.f32 %v1137_v18, %v1136_v57  ;;  %v1154_v53 = vadd.f32 %v1153_v26, %v1070_v56  ;;  %v4307_v38 = vpack.c.bf16 %v3795_v39, %v3793_v48  ;;  %v1127_v60 = vrot.slane %v1126_v51, 1  ;;  %v1001_v48 = vpop.permute.xlu0 %1000  ;;  %v4309_v39 = vld [vmem:[#allocation19_spill] sm:$0xff]  ;;  %v3128_v57 = vld [vmem:[#allocation2 + $0x50] sm:$0xff]  ;;  %v3129_v18 = vld [vmem:[#allocation2 + $0x58] sm:$0xff] }
 0x43f   :  { %2773 = vmatpush3.bf16.msra.mxu0 %v4306_v8  ;;  %v1133_v2 = vrot.slane %v1132_v11, 1  ;;  %v1144_v1 = vadd.f32 %v1143_v35, %v1142_v14  ;;  %v1149_v21 = vrot.slane %v1148_v17, 2  ;;  %v4308_v24 = vpack.c.bf16 %v3799_v58, %v3797_v10  ;;  %v4311_v58 = vld [vmem:[#allocation21_spill] sm:$0xff] }
 0x440   :  { %2775 = vmatprep.subr.bf16.mxu0 %v4307_v38  ;;  %v1116_v49 = vadd.f32 %v1115_v22, %v1114_v20  ;;  %v1122_v47 = vadd.f32 %v1121_v13, %v1120_v30  ;;  %v1139_v42 = vrot.slane %v1138_v32, 1  ;;  %v1155_v41 = vrot.slane %v1154_v53, 2 }
 0x441   :  { %2806 = vmatpush3.bf16.msra.mxu1 %v4308_v24  ;;  %v1128_v19 = vadd.f32 %v1127_v60, %v1126_v51  ;;  %v1134_v59 = vadd.f32 %v1133_v2, %v1132_v11  ;;  %v1145_v62 = vrot.slane %v1144_v1, 1  ;;  %v1150_v28 = vadd.f32 %v1149_v21, %v1148_v17  ;;  %v4320_v51 = vld [vmem:[#allocation27_spill] sm:$0xff]  ;;  %v4321_v11 = vld [vmem:[#allocation26_spill] sm:$0xff] }
 0x442   :  { %2807 = vmatprep.subr.bf16.mxu1 %v4302_v52  ;;  %v4310_v34 = vpack.c.bf16 %v3803_v43, %v4309_v39  ;;  %v1399_v54 = vmax.f32 %v1116_v49, 0.0  ;;  %v1400_v16 = vmax.f32 %v1122_v47, 0.0  ;;  %v1140_v36 = vadd.f32 %v1139_v42, %v1138_v32  ;;  %v4323_v32 = vld [vmem:[#allocation29_spill] sm:$0xff]  ;;  %v1011_v24 = vpop.permute.xlu0 %1010 }
 0x443   :  { %v1156_v10 = vadd.f32 %v1155_v41, %v1154_v53  ;;  %v4313_v5 = vpack.c.bf16 %v4311_v58, %v4312_v27  ;;  %v1401_v25 = vmax.f32 %v1128_v19, 0.0  ;;  %v1146_v50 = vadd.f32 %v1145_v62, %v1144_v1  ;;  %v4324_v53 = vld [vmem:[#allocation28_spill] sm:$0xff]  ;;  %v3130_v1 = vld [vmem:[#allocation2 + $0x60] sm:$0xff]  ;;  %v3131_v41 = vld [vmem:[#allocation2 + $0x68] sm:$0xff] }
 0x444   :  { %2777 = vmatpush3.bf16.msra.mxu0 %v4310_v34  ;;  %v1402_v55 = vmax.f32 %v1134_v59, 0.0  ;;  %v1151_v31 = vrot.slane %v1150_v28, 1  ;;  %v4316_v43 = vpack.c.bf16 %v4314_v12, %v4315_v61  ;;  %v1403_v3 = vmax.f32 %v1140_v36, 0.0  ;;  %v4326_v59 = vld [vmem:[#allocation31_spill] sm:$0xff]  ;;  %v4327_v62 = vld [vmem:[#allocation30_spill] sm:$0xff]  ;;  %v3132_v34 = vld [vmem:[#allocation2 + $0x70] sm:$0xff] }
 0x445   :  { %2779 = vmatprep.subr.bf16.mxu0 %v4313_v5  ;;  %v1157_v46 = vrot.slane %v1156_v10, 1  ;;  %v1159_v4 = vrot.slane %v3995_v15, 4  ;;  %v1072_v56 = vmul.f32 %v3127_v0, %v1001_v48  ;;  %v1404_v40 = vmax.f32 %v1146_v50, 0.0  ;;  %v4329_v36 = vld [vmem:[#allocation33_spill] sm:$0xff]  ;;  %v4333_v12 = vld [vmem:[#allocation34_spill] sm:$0xff] }
 0x446   :  { %2809 = vmatpush3.bf16.msra.mxu1 %v4316_v43  ;;  %v4029_v9 = vadd.f32 %v1151_v31, %v1150_v28  ;;  %v1073_v29 = vmul.f32 %v3128_v57, %v1001_v48  ;;  %v4319_v14 = vpack.c.bf16 %v4317_v23, %v4318_v7  ;;  %v2796_v45 = vpack.c.bf16 %v4022_v44, %v4020_v6  ;;  %v3133_v50 = vld [vmem:[#allocation2 + $0x78] sm:$0xff]  ;;  %v4332_v31 = vld [vmem:[#allocation35_spill] sm:$0xff] }
 0x447   :  { %2810 = vmatprep.subr.bf16.mxu1 %v4302_v52  ;;  %v4037_v37 = vsel %vm559_vm0, %v1402_v55, %v1399_v54  ;;  %v4039_v20 = vadd.f32 %v1157_v46, %v1156_v10  ;;  %v1160_v30 = vadd.f32 %v1159_v4, %v3995_v15  ;;  %v1074_v26 = vmul.f32 %v3129_v18, %v1001_v48  ;;  %v4330_v10 = vld [vmem:[#allocation32_spill] sm:$0xff] }
 0x448   :  { %2781 = vmatpush3.bf16.msra.mxu0 %v4319_v14  ;;  %v4322_v35 = vpack.c.bf16 %v4320_v51, %v4321_v11  ;;  %v4046_v17 = vsel %vm559_vm0, %v1403_v3, %v1400_v16  ;;  %v4049_v8 = vsel %vm559_vm0, %v1404_v40, %v1401_v25  ;;  %v1165_v22 = vrot.slane %v1072_v56, 4  ;;  %v4339_v51 = vld [vmem:[#allocation38_spill] sm:$0xff] }
 0x449   :  { %v1171_v13 = vrot.slane %v1073_v29, 4  ;;  %v4325_v38 = vpack.c.bf16 %v4323_v32, %v4324_v53  ;;  %v1161_v60 = vrot.slane %v1160_v30, 2  ;;  %v1405_v15 = vmax.f32 %v4029_v9, 0.0  ;;  %v3134_v9 = vld [vmem:[#allocation2 + $0x80] sm:$0xff]  ;;  %v3135_v32 = vld [vmem:[#allocation2 + $0x88] sm:$0xff] }
 0x44a   :  { %2783 = vmatprep.subr.bf16.mxu0 %v4322_v35  ;;  %v1177_v2 = vrot.slane %v1074_v26, 4  ;;  %v1075_v21 = vmul.f32 %v3130_v1, %v1006_v33  ;;  %v1406_v49 = vmax.f32 %v4039_v20, 0.0  ;;  %v1166_v47 = vadd.f32 %v1165_v22, %v1072_v56 }
 0x44b   :  { %2812 = vmatpush3.bf16.msra.mxu1 %v4325_v38  ;;  %v1172_v42 = vadd.f32 %v1171_v13, %v1073_v29  ;;  %v1076_v19 = vmul.f32 %v3131_v41, %v1006_v33  ;;  %v4328_v28 = vpack.c.bf16 %v4326_v59, %v4327_v62  ;;  %v1162_v48 = vadd.f32 %v1161_v60, %v1160_v30  ;;  %v4335_v29 = vld [vmem:[#allocation37_spill] sm:$0xff]  ;;  %v4342_v60 = vld [vmem:[#allocation40_spill] sm:$0xff] }
 0x44c   :  { %2813 = vmatprep.subr.bf16.mxu1 %v4302_v52  ;;  %v1178_v39 = vadd.f32 %v1177_v2, %v1074_v26  ;;  %v1077_v54 = vmul.f32 %v3132_v34, %v1006_v33  ;;  %v1183_v16 = vrot.slane %v1075_v21, 4  ;;  %v4331_v58 = vpack.c.bf16 %v4329_v36, %v4330_v10  ;;  %v4336_v33 = vld [vmem:[#allocation36_spill] sm:$0xff]  ;;  %v4338_v26 = vld [vmem:[#allocation39_spill] sm:$0xff]  ;;  %v4341_v38 = vld [vmem:[#allocation41_spill] sm:$0xff]  ;;  %v1016_v36 = vpop.permute.xlu1 %1015 }
 0x44d   :  { %2785 = vmatpush3.bf16.msra.mxu0 %v4328_v28  ;;  %v1167_v27 = vrot.slane %v1166_v47, 2  ;;  %v1173_v5 = vrot.slane %v1172_v42, 2  ;;  %v1189_v25 = vrot.slane %v1076_v19, 4  ;;  %v1078_v55 = vmul.f32 %v3133_v50, %v1011_v24  ;;  %v4344_v28 = vld [vmem:[#allocation43_spill] sm:$0xff]  ;;  %v4347_v10 = vld [vmem:[#allocation45_spill] sm:$0xff] }
 0x44e   :  { %2787 = vmatprep.subr.bf16.mxu0 %v4331_v58  ;;  %v4334_v61 = vpack.c.bf16 %v4332_v31, %v4333_v12  ;;  %v1163_v43 = vrot.slane %v1162_v48, 1  ;;  %v1179_v3 = vrot.slane %v1178_v39, 2  ;;  %v1184_v46 = vadd.f32 %v1183_v16, %v1075_v21  ;;  %v4348_v58 = vld [vmem:[#allocation44_spill] sm:$0xff]  ;;  %v4350_v12 = vld [vmem:[#allocation47_spill] sm:$0xff] }
 0x44f   :  { %v1195_v4 = vrot.slane %v1077_v54, 4  ;;  %v1168_v0 = vadd.f32 %v1167_v27, %v1166_v47  ;;  %v1174_v56 = vadd.f32 %v1173_v5, %v1172_v42  ;;  %v1190_v40 = vadd.f32 %v1189_v25, %v1076_v19 }
 0x450   :  { %2815 = vmatpush3.bf16.msra.mxu1 %v4334_v61  ;;  %v1079_v57 = vmul.f32 %v3134_v9, %v1011_v24  ;;  %v4337_v23 = vpack.c.bf16 %v4335_v29, %v4336_v33  ;;  %v1164_v7 = vadd.f32 %v1163_v43, %v1162_v48  ;;  %v1180_v14 = vadd.f32 %v1179_v3, %v1178_v39  ;;  %v4345_v48 = vld [vmem:[#allocation42_spill] sm:$0xff]  ;;  %v3137_v33 = vld [vmem:[#allocation2 + $0x98] sm:$0xff] }
 0x451   :  { %2816 = vmatprep.subr.bf16.mxu1 %v4302_v52  ;;  %v1185_v30 = vrot.slane %v1184_v46, 2  ;;  %v1196_v18 = vadd.f32 %v1195_v4, %v1077_v54  ;;  %v4340_v11 = vpack.c.bf16 %v4338_v26, %v4339_v51  ;;  %v1169_v35 = vrot.slane %v1168_v0, 1  ;;  %v3138_v26 = vld [vmem:[#allocation2 + $0xa0] sm:$0xff] }
 0x452   :  { %2789 = vmatpush3.bf16.msra.mxu0 %v4337_v23  ;;  %v1175_v22 = vrot.slane %v1174_v56, 1  ;;  %v1191_v13 = vrot.slane %v1190_v40, 2  ;;  %v1080_v53 = vmul.f32 %v3135_v32, %v1011_v24  ;;  %v4343_v2 = vpack.c.bf16 %v4341_v38, %v4342_v60 }
 0x453   :  { %2791 = vmatprep.subr.bf16.mxu0 %v4340_v11  ;;  %v1407_v1 = vmax.f32 %v1164_v7, 0.0  ;;  %v1181_v21 = vrot.slane %v1180_v14, 1  ;;  %v1186_v47 = vadd.f32 %v1185_v30, %v1184_v46  ;;  %v1197_v42 = vrot.slane %v1196_v18, 2  ;;  %v1021_v7 = vpop.permute.xlu0 %1020 }
 0x454   :  { %2818 = vmatpush3.bf16.msra.mxu1 %v4343_v2  ;;  %v4077_v41 = vadd.f32 %v1169_v35, %v1168_v0  ;;  %v4079_v19 = vadd.f32 %v1175_v22, %v1174_v56  ;;  %v1192_v59 = vadd.f32 %v1191_v13, %v1190_v40  ;;  %v1201_v62 = vrot.slane %v1078_v55, 4  ;;  %v3136_v56 = vld [vmem:[#allocation2 + $0x90] sm:$0xff] }
 0x455   :  { %2819 = vmatprep.subr.bf16.mxu1 %v4302_v52  ;;  %v4346_v39 = vpack.c.bf16 %v4344_v28, %v4345_v48  ;;  %v4086_v24 = vsel %vm561_vm1, %v1405_v15, %v4037_v37  ;;  %v4088_v34 = vadd.f32 %v1181_v21, %v1180_v14  ;;  %v1187_v54 = vrot.slane %v1186_v47, 1  ;;  %v4351_v37 = vld [vmem:[#allocation46_spill] sm:$0xff] }
 0x456   :  { %v1198_v16 = vadd.f32 %v1197_v42, %v1196_v18  ;;  %v4349_v27 = vpack.c.bf16 %v4347_v10, %v4348_v58  ;;  %v4095_v5 = vsel %vm561_vm1, %v1407_v1, %v4049_v8  ;;  %v1408_v25 = vmax.f32 %v4077_v41, 0.0  ;;  %v3140_v1 = vld [vmem:[#allocation2 + $0xb0] sm:$0xff] }
 0x457   :  { %2793 = vmatpush3.bf16.msra.mxu0 %v4346_v39  ;;  %v1193_v50 = vrot.slane %v1192_v59, 1  ;;  %v1202_v31 = vadd.f32 %v1201_v62, %v1078_v55  ;;  %v4352_v15 = vpack.c.bf16 %v4350_v12, %v4351_v37  ;;  %v1409_v61 = vmax.f32 %v4079_v19, 0.0 }
 0x458   :  { %2795 = vmatprep.subr.bf16.mxu0 %v4349_v27  ;;  %v4102_v43 = vadd.f32 %v1187_v54, %v1186_v47  ;;  %v1199_v3 = vrot.slane %v1198_v16, 1  ;;  %v1207_v46 = vrot.slane %v1079_v57, 4  ;;  %v1213_v0 = vrot.slane %v1080_v53, 4 }
 0x459   :  { %2821 = vmatpush3.bf16.msra.mxu1 %v4352_v15  ;;  %v4105_v4 = vadd.f32 %v1193_v50, %v1192_v59  ;;  %v1203_v8 = vrot.slane %v1202_v31, 2  ;;  %v1081_v40 = vmul.f32 %v3136_v56, %v1016_v36  ;;  %v1410_v55 = vmax.f32 %v4088_v34, 0.0  ;;  %v3141_v59 = vld [vmem:[#allocation2 + $0xb8] sm:$0xff] }
 0x45a   :  { %2846 = vmatprep.subr.bf16.mxu1 %v4302_v52  ;;  %v4111_v9 = vadd.f32 %v1199_v3, %v1198_v16  ;;  %v1208_v29 = vadd.f32 %v1207_v46, %v1079_v57  ;;  %v1082_v23 = vmul.f32 %v3137_v33, %v1016_v36  ;;  %v1411_v14 = vmax.f32 %v4102_v43, 0.0  ;;  %v3139_v57 = vld [vmem:[#allocation2 + $0xa8] sm:$0xff] }
 0x45b   :  { %2797 = vmatpush3.bf16.msra.mxu0 %v2796_v45  ;;  %v1204_v30 = vadd.f32 %v1203_v8, %v1202_v31  ;;  %v1214_v18 = vadd.f32 %v1213_v0, %v1080_v53  ;;  %v1083_v51 = vmul.f32 %v3138_v26, %v1016_v36  ;;  %v1412_v11 = vmax.f32 %v4105_v4, 0.0 }
 0x45c   :  { %2822 = vmatprep.subr.bf16.mxu0 %v4302_v52  ;;  %v1209_v6 = vrot.slane %v1208_v29, 2  ;;  %v1219_v44 = vrot.slane %v1081_v40, 4  ;;  %v1225_v45 = vrot.slane %v1082_v23, 4  ;;  %v1084_v32 = vmul.f32 %v3139_v57, %v1021_v7 }
 0x45d   :  { %v1205_v35 = vrot.slane %v1204_v30, 1  ;;  %v1215_v22 = vrot.slane %v1214_v18, 2  ;;  %v1231_v13 = vrot.slane %v1083_v51, 4  ;;  %v1085_v21 = vmul.f32 %v3140_v1, %v1021_v7 }
 0x45e   :  { %v1210_v38 = vadd.f32 %v1209_v6, %v1208_v29  ;;  %v1220_v60 = vadd.f32 %v1219_v44, %v1081_v40  ;;  %v1226_v2 = vadd.f32 %v1225_v45, %v1082_v23  ;;  %v1086_v62 = vmul.f32 %v3141_v59, %v1021_v7  ;;  %v1930_v59 = vld [vmem:[#allocation8] sm:$0xff] }
 0x45f   :  { %v1206_v47 = vadd.f32 %v1205_v35, %v1204_v30  ;;  %v1216_v42 = vadd.f32 %v1215_v22, %v1214_v18  ;;  %v1232_v53 = vadd.f32 %v1231_v13, %v1083_v51  ;;  %v1237_v54 = vrot.slane %v1084_v32, 4 }
 0x460   :  { %v1211_v28 = vrot.slane %v1210_v38, 1  ;;  %v1221_v48 = vrot.slane %v1220_v60, 2  ;;  %v1227_v39 = vrot.slane %v1226_v2, 2  ;;  %v1413_v16 = vmax.f32 %v4111_v9, 0.0 }
 0x461   :  { %v1217_v36 = vrot.slane %v1216_v42, 1  ;;  %v1233_v10 = vrot.slane %v1232_v53, 2  ;;  %v1243_v58 = vrot.slane %v1085_v21, 4  ;;  %v1238_v12 = vadd.f32 %v1237_v54, %v1084_v32 }
 0x462   :  { %v1212_v27 = vadd.f32 %v1211_v28, %v1210_v38  ;;  %v1222_v50 = vadd.f32 %v1221_v48, %v1220_v60  ;;  %v1228_v31 = vadd.f32 %v1227_v39, %v1226_v2  ;;  %v1414_v37 = vmax.f32 %v1206_v47, 0.0  ;;  %v1932_v28 = vld [vmem:[#allocation8 + $0x10] sm:$0xff]  ;;  %v1933_v39 = vld [vmem:[#allocation8 + $0x18] sm:$0xff] }
 0x463   :  { %v1234_v15 = vadd.f32 %v1233_v10, %v1232_v53  ;;  %v1244_v3 = vadd.f32 %v1243_v58, %v1085_v21  ;;  %v1249_v46 = vrot.slane %v1086_v62, 4  ;;  %v1218_v4 = vadd.f32 %v1217_v36, %v1216_v42  ;;  %v1935_v36 = vld [vmem:[#allocation8 + $0x28] sm:$0xff]  ;;  %v1936_v58 = vld [vmem:[#allocation8 + $0x30] sm:$0xff] }
 0x464   :  { %v1223_v8 = vrot.slane %v1222_v50, 1  ;;  %v1229_v0 = vrot.slane %v1228_v31, 1  ;;  %v1239_v56 = vrot.slane %v1238_v12, 2  ;;  %v1415_v40 = vmax.f32 %v1212_v27, 0.0  ;;  %v1937_v27 = vld [vmem:[#allocation8 + $0x38] sm:$0xff] }
 0x465   :  { %v1235_v29 = vrot.slane %v1234_v15, 1  ;;  %v1245_v33 = vrot.slane %v1244_v3, 2  ;;  %v1250_v23 = vadd.f32 %v1249_v46, %v1086_v62  ;;  %v1764_v18 = vsel %vm561_vm1, %v1406_v49, %v4046_v17  ;;  %v1931_v62 = vld [vmem:[#allocation8 + $0x8] sm:$0xff] }
 0x466   :  { %v1224_v9 = vadd.f32 %v1223_v8, %v1222_v50  ;;  %v1230_v7 = vadd.f32 %v1229_v0, %v1228_v31  ;;  %v1240_v30 = vadd.f32 %v1239_v56, %v1238_v12  ;;  %v1765_v44 = vsel %vm563_vm2, %v1409_v61, %v1764_v18  ;;  %v1938_v31 = vld [vmem:[#allocation8 + $0x40] sm:$0xff]  ;;  %v1939_v12 = vld [vmem:[#allocation8 + $0x48] sm:$0xff]  ;;  %v1944_v56 = vld [vmem:[#allocation8 + $0x70] sm:$0xff] }
 0x467   :  { %v1236_v26 = vadd.f32 %v1235_v29, %v1234_v15  ;;  %v1246_v51 = vadd.f32 %v1245_v33, %v1244_v3  ;;  %v1251_v6 = vrot.slane %v1250_v23, 2  ;;  %v1416_v45 = vmax.f32 %v1218_v4, 0.0  ;;  %v1940_v15 = vld [vmem:[#allocation8 + $0x50] sm:$0xff]  ;;  %v1941_v3 = vld [vmem:[#allocation8 + $0x58] sm:$0xff]  ;;  %v1942_v4 = vld [vmem:[#allocation8 + $0x60] sm:$0xff] }
 0x468   :  { %v1418_v35 = vmax.f32 %v1230_v7, 0.0  ;;  %v1241_v22 = vrot.slane %v1240_v30, 1  ;;  %v1766_v13 = vsel %vm565_vm3, %v1412_v11, %v1765_v44  ;;  %v1417_v57 = vmax.f32 %v1224_v9, 0.0  ;;  %v1943_v8 = vld [vmem:[#allocation8 + $0x68] sm:$0xff]  ;;  %v2025_v33 = vld [vmem:[#allocation8 + $0x80] sm:$0xff]  ;;  %v2027_v9 = vld [vmem:[#allocation8 + $0x90] sm:$0xff] }
 0x469   :  { %v1419_v32 = vmax.f32 %v1236_v26, 0.0  ;;  %v1247_v38 = vrot.slane %v1246_v51, 1  ;;  %v1252_v60 = vadd.f32 %v1251_v6, %v1250_v23  ;;  %v1767_v20 = vsel %vm567_vm4, %v1415_v40, %v1766_v13  ;;  %v1945_v40 = vld [vmem:[#allocation8 + $0x78] sm:$0xff]  ;;  %v2026_v23 = vld [vmem:[#allocation8 + $0x88] sm:$0xff]  ;;  %v2029_v26 = vld [vmem:[#allocation8 + $0xa0] sm:$0xff] }
 0x46a   :  { %v1242_v2 = vadd.f32 %v1241_v22, %v1240_v30  ;;  %v1772_v17 = vsel %vm563_vm2, %v1410_v55, %v4095_v5  ;;  %v1758_v49 = vsel %vm563_vm2, %v1408_v25, %v4086_v24  ;;  %v1768_v21 = vsel %vm569_vm5, %v1418_v35, %v1767_v20  ;;  %v2028_v30 = vld [vmem:[#allocation8 + $0x98] sm:$0xff]  ;;  %v2031_v44 = vld [vmem:[#allocation8 + $0xb0] sm:$0xff]  ;;  %v2033_v22 = vld [vmem:[#allocation8 + $0xc0] sm:$0xff] }
 0x46b   :  { %v1253_v19 = vrot.slane %v1252_v60, 1  ;;  %v1248_v61 = vadd.f32 %v1247_v38, %v1246_v51  ;;  %v1773_v11 = vsel %vm565_vm3, %v1413_v16, %v1772_v17  ;;  %v1759_v1 = vsel %vm565_vm3, %v1411_v14, %v1758_v49  ;;  %v1934_v16 = vld [vmem:[#allocation8 + $0x20] sm:$0xff]  ;;  %v2030_v51 = vld [vmem:[#allocation8 + $0xa8] sm:$0xff]  ;;  %v2036_v38 = vld [vmem:[#allocation8 + $0xd8] sm:$0xff] }
 0x46c   :  { %v1420_v47 = vmax.f32 %v1242_v2, 0.0  ;;  %v1760_v34 = vsel %vm567_vm4, %v1414_v37, %v1759_v1  ;;  %v1774_v55 = vsel %vm567_vm4, %v1416_v45, %v1773_v11  ;;  %v2823_v48 = vpack.c.bf16 %v1931_v62, %v1930_v59  ;;  %v2032_v45 = vld [vmem:[#allocation8 + $0xb8] sm:$0xff]  ;;  %v2034_v13 = vld [vmem:[#allocation8 + $0xc8] sm:$0xff] }
 0x46d   :  { %v1254_v42 = vadd.f32 %v1253_v19, %v1252_v60  ;;  %v1421_v5 = vmax.f32 %v1248_v61, 0.0  ;;  %v1761_v41 = vsel %vm569_vm5, %v1417_v57, %v1760_v34  ;;  %v1775_v24 = vsel %vm569_vm5, %v1419_v32, %v1774_v55  ;;  %v2035_v32 = vld [vmem:[#allocation8 + $0xd0] sm:$0xff]  ;;  %v2040_v59 = vld [vmem:[#allocation8 + $0xf8] sm:$0xff] }
 0x46e   :  { %v1762_v25 = vsel %vm571_vm6, %v1420_v47, %v1761_v41  ;;  %v2826_v54 = vpack.c.bf16 %v1933_v39, %v1932_v28  ;;  %v2829_v10 = vpack.c.bf16 %v1935_v36, %v1934_v16  ;;  %v2832_v50 = vpack.c.bf16 %v1937_v27, %v1936_v58  ;;  %v2120_v28 = vld [vmem:[#allocation8 + $0x100] sm:$0xff]  ;;  %v2122_v39 = vld [vmem:[#allocation8 + $0x110] sm:$0xff]  ;;  %v2123_v16 = vld [vmem:[#allocation8 + $0x118] sm:$0xff] }
 0x46f   :  { %v1769_v53 = vsel %vm571_vm6, %v1421_v5, %v1768_v21  ;;  %v1422_v43 = vmax.f32 %v1254_v42, 0.0  ;;  %v2835_v37 = vpack.c.bf16 %v1939_v12, %v1938_v31  ;;  %v2838_v46 = vpack.c.bf16 %v1941_v3, %v1940_v15  ;;  %v2326_v5 = vld [vmem:[%s4217_s4] ss:$0 sm:$0xff]  ;;  %v2125_v58 = vld [vmem:[#allocation8 + $0x128] sm:$0xff] }
 0x470   :  { %1844 = vmatprep.mubr.f32.mxu0 %v1769_v53  ;;  %v2841_v0 = vpack.c.bf16 %v1943_v8, %v1942_v4  ;;  %v2844_v29 = vpack.c.bf16 %v1945_v40, %v1944_v56  ;;  %v2847_v7 = vpack.c.bf16 %v2026_v23, %v2025_v33  ;;  %v2850_v18 = vpack.c.bf16 %v2028_v30, %v2027_v9  ;;  %v2038_v53 = vld [vmem:[#allocation8 + $0xe8] sm:$0xff]  ;;  %v2127_v31 = vld [vmem:[#allocation8 + $0x138] sm:$0xff] }
 0x471   :  { %v1776_v14 = vsel %vm571_vm6, %v1422_v43, %v1775_v24  ;;  %1845 = vmatmul.mubr.f32.vlgmr.msra.gmra.mrb[2].mxu0 %v1762_v25  ;;  %v2853_v6 = vpack.c.bf16 %v2030_v51, %v2029_v26  ;;  %v2856_v35 = vpack.c.bf16 %v2032_v45, %v2031_v44  ;;  %v2859_v57 = vpack.c.bf16 %v2034_v13, %v2033_v22  ;;  %v2037_v25 = vld [vmem:[#allocation8 + $0xe0] sm:$0xff]  ;;  %v2129_v15 = vld [vmem:[#allocation8 + $0x148] sm:$0xff]  ;;  %v2131_v4 = vld [vmem:[#allocation8 + $0x158] sm:$0xff] }
 0x472   :  { %2568 = vmatmul.mubr.f32.vlgmr.msra.gmra.mrb[2].mxu1 %v1776_v14  ;;  %2602 = vmatprep.mubr.msk.f32.mxu0 %vm3293_vm8, %v4301_v63  ;;  %v2862_v60 = vpack.c.bf16 %v2036_v38, %v2035_v32  ;;  %v2865_v43 = vpack.c.bf16 %v2038_v53, %v2037_v25  ;;  %v2039_v14 = vld [vmem:[#allocation8 + $0xf0] sm:$0xff]  ;;  %v2874_v36 = vpack.c.bf16 %v2123_v16, %v2122_v39  ;;  %v4353_v56 = vld [vmem:[#allocation16_spill] sm:$0xff]  ;;  %v2135_v44 = vld [vmem:[#allocation8 + $0x178] sm:$0xff] }
 0x473   :  { %2637 = vmatprep.mubr.msk.f32.mxu1 %vm3293_vm8, %v4301_v63  ;;  %2824 = vmatpush3.bf16.msra.mxu0 %v2823_v48  ;;  %v2868_v62 = vpack.c.bf16 %v2040_v59, %v2039_v14  ;;  %v2121_v48 = vld [vmem:[#allocation8 + $0x108] sm:$0xff]  ;;  %v2216_v13 = vld [vmem:[#allocation10 + $0x10] sm:$0xff]  ;;  %v2217_v32 = vld [vmem:[#allocation10 + $0x18] sm:$0xff] }
 0x474   :  { %2825 = vmatprep.subr.bf16.mxu0 %v4302_v52  ;;  %2848 = vmatpush3.bf16.msra.mxu1 %v2847_v7  ;;  %v2133_v26 = vld [vmem:[#allocation8 + $0x168] sm:$0xff]  ;;  %v2898_v38 = vpack.c.bf16 %v2217_v32, %v2216_v13  ;;  %v4355_v39 = vld [vmem:[#allocation18_spill] sm:$0xff] }
 0x475   :  { %2849 = vmatprep.subr.bf16.mxu1 %v4302_v52  ;;  %v2215_v22 = vld [vmem:[#allocation10 + $0x8] sm:$0xff] }
 0x476   :  { %v2227_v14 = vld [vmem:[#allocation10 + $0x68] sm:$0xff] }
 0x477   :  { %2827 = vmatpush3.bf16.msra.mxu0 %v2826_v54  ;;  %v2871_v54 = vpack.c.bf16 %v2121_v48, %v2120_v28  ;;  %v2229_v28 = vld [vmem:[#allocation10 + $0x78] sm:$0xff] }
 0x478   :  { %2828 = vmatprep.subr.bf16.mxu0 %v4302_v52  ;;  %2851 = vmatpush3.bf16.msra.mxu1 %v2850_v18  ;;  %v2132_v18 = vld [vmem:[#allocation8 + $0x160] sm:$0xff] }
 0x479   :  { %2852 = vmatprep.subr.bf16.mxu1 %v4302_v52  ;;  %v2889_v51 = vpack.c.bf16 %v2133_v26, %v2132_v18 }
 0x47b   :  { %2830 = vmatpush3.bf16.msra.mxu0 %v2829_v10  ;;  %v2124_v10 = vld [vmem:[#allocation8 + $0x120] sm:$0xff] }
 0x47c   :  { %2831 = vmatprep.subr.bf16.mxu0 %v4302_v52  ;;  %2854 = vmatpush3.bf16.msra.mxu1 %v2853_v6  ;;  %v2877_v27 = vpack.c.bf16 %v2125_v58, %v2124_v10  ;;  %v2134_v6 = vld [vmem:[#allocation8 + $0x170] sm:$0xff] }
 0x47d   :  { %2855 = vmatprep.subr.bf16.mxu1 %v4302_v52  ;;  %v2892_v45 = vpack.c.bf16 %v2135_v44, %v2134_v6 }
 0x47f   :  { %2833 = vmatpush3.bf16.msra.mxu0 %v2832_v50  ;;  %v2126_v50 = vld [vmem:[#allocation8 + $0x130] sm:$0xff] }
 0x480   :  { %2834 = vmatprep.subr.bf16.mxu0 %v4302_v52  ;;  %2857 = vmatpush3.bf16.msra.mxu1 %v2856_v35  ;;  %v2880_v12 = vpack.c.bf16 %v2127_v31, %v2126_v50  ;;  %v2214_v35 = vld [vmem:[#allocation10] sm:$0xff]  ;;  %v2327_v31 = vld [vmem:[%s4221_s8] ss:$0 sm:$0xff] }
 0x481   :  { %2858 = vmatprep.subr.bf16.mxu1 %v4302_v52 }
 0x483   :  { %2836 = vmatpush3.bf16.msra.mxu0 %v2835_v37  ;;  %v2128_v37 = vld [vmem:[#allocation8 + $0x140] sm:$0xff] }
 0x484   :  { %2837 = vmatprep.subr.bf16.mxu0 %v4302_v52  ;;  %2860 = vmatpush3.bf16.msra.mxu1 %v2859_v57  ;;  %v2883_v3 = vpack.c.bf16 %v2129_v15, %v2128_v37  ;;  %v2895_v57 = vpack.c.bf16 %v2215_v22, %v2214_v35 }
 0x485   :  { %2861 = vmatprep.subr.bf16.mxu1 %v4302_v52 }
 0x487   :  { %2839 = vmatpush3.bf16.msra.mxu0 %v2838_v46  ;;  %v2130_v46 = vld [vmem:[#allocation8 + $0x150] sm:$0xff] }
 0x488   :  { %2840 = vmatprep.subr.bf16.mxu0 %v4302_v52  ;;  %2863 = vmatpush3.bf16.msra.mxu1 %v2862_v60  ;;  %v2886_v8 = vpack.c.bf16 %v2131_v4, %v2130_v46  ;;  %v2219_v60 = vld [vmem:[#allocation10 + $0x28] sm:$0xff] }
 0x489   :  { %2864 = vmatprep.subr.bf16.mxu1 %v4302_v52 }
 0x48b   :  { %2842 = vmatpush3.bf16.msra.mxu0 %v2841_v0  ;;  %v4180_v0 = vld [vmem:[%s4219_s6] sm:$0x7] }
 0x48c   :  { %2843 = vmatprep.subr.bf16.mxu0 %v4302_v52  ;;  %2866 = vmatpush3.bf16.msra.mxu1 %v2865_v43  ;;  %v1949_v40 = vrot.slane %v4180_v0, %v4353_v56  ;;  %v2226_v43 = vld [vmem:[#allocation10 + $0x60] sm:$0xff] }
 0x48d   :  { %2867 = vmatprep.subr.bf16.mxu1 %v4302_v52  ;;  %v2913_v59 = vpack.c.bf16 %v2227_v14, %v2226_v43 }
 0x48f   :  { %2845 = vmatpush3.bf16.msra.mxu0 %v2844_v29 }
 0x490   :  { %2870 = vmatprep.subr.bf16.mxu0 %v4302_v52  ;;  %2869 = vmatpush3.bf16.msra.mxu1 %v2868_v62  ;;  %v2228_v62 = vld [vmem:[#allocation10 + $0x70] sm:$0xff] }
 0x491   :  { %2894 = vmatprep.subr.bf16.mxu1 %v4302_v52  ;;  %v2916_v48 = vpack.c.bf16 %v2229_v28, %v2228_v62 }
 0x506   :  { %v1728_v2 = vpop.f32.mrb[0].mxu1 }
 0x507   :  { %v2534_v20 = vpop.f32.mrb[1].mxu1 }
 0x508   :  { %v2220_v20 = vld [vmem:[#allocation10 + $0x30] sm:$0xff] }
 0x50a   :  { %v2360_v17 = vpop.f32.mrb[0].mxu0 }
 0x50b   :  { %v2361_v49 = vpop.f32.mrb[1].mxu0 }
 0x50c   :  { %v2362_v19 = vadd.f32 %v2361_v49, %v2360_v17  ;;  %v2221_v17 = vld [vmem:[#allocation10 + $0x38] sm:$0xff] }
 0x50d   :  { %v2904_v49 = vpack.c.bf16 %v2221_v17, %v2220_v20 }
 0x50e   :  { %v1729_v61 = vadd.f32 %v2362_v19, %v1728_v2  ;;  %v2222_v19 = vld [vmem:[#allocation10 + $0x40] sm:$0xff] }
 0x544   :  { %v2412_v11 = vpop.f32.mrb[2].mxu0 }
 0x545   :  { %v1916_v1 = vpop.f32.mrb[2].mxu1  ;;  %v2413_v21 = vpop.f32.mrb[3].mxu0 }
 0x546   :  { %v2569_v47 = vpop.f32.mrb[3].mxu1  ;;  %v2414_v34 = vadd.f32 %v2413_v21, %v2412_v11  ;;  %v2225_v21 = vld [vmem:[#allocation10 + $0x58] sm:$0xff] }
 0x548   :  { %v1847_v42 = vadd.f32 %v2414_v34, %v1729_v61  ;;  %v2223_v61 = vld [vmem:[#allocation10 + $0x48] sm:$0xff]  ;;  %v4354_v34 = vld [vmem:[#allocation17_spill] sm:$0xff] }
 0x549   :  { %v2907_v11 = vpack.c.bf16 %v2223_v61, %v2222_v19 }
 0x54a   :  { %v1917_v55 = vadd.f32 %v1916_v1, %v1847_v42  ;;  %v2224_v1 = vld [vmem:[#allocation10 + $0x50] sm:$0xff]  ;;  %v2044_v42 = vrot.slane %v4180_v0, %v4354_v34 }
 0x54b   :  { %v2910_v47 = vpack.c.bf16 %v2225_v21, %v2224_v1 }
 0x54c   :  { %v1927_v41 = vadd.f32 %v2326_v5, %v1917_v55 }
 0x54e   :  { %v1928_v24 = vmax.f32 %v1927_v41, 0.0 }
 0x550   :  { %2603 = vmatmul.mubr.f32.vlgmr.msra.gmra.mrb[4].mxu0 %v1928_v24 }
 0x551   :  { %2672 = vmatprep.mubr.msk.f32.mxu0 %vm3293_vm8, %v4301_v63  ;;  %2872 = vmatpush3.bf16.msra.mxu0 %v2871_v54  ;;  %v2139_v54 = vrot.slane %v4180_v0, %v4355_v39 }
 0x552   :  { %2873 = vmatprep.subr.bf16.mxu0 %v4302_v52 }
 0x555   :  { %2875 = vmatpush3.bf16.msra.mxu0 %v2874_v36 }
 0x556   :  { %2876 = vmatprep.subr.bf16.mxu0 %v4302_v52 }
 0x559   :  { %2878 = vmatpush3.bf16.msra.mxu0 %v2877_v27 }
 0x55a   :  { %2879 = vmatprep.subr.bf16.mxu0 %v4302_v52 }
 0x55d   :  { %2881 = vmatpush3.bf16.msra.mxu0 %v2880_v12 }
 0x55e   :  { %2882 = vmatprep.subr.bf16.mxu0 %v4302_v52 }
 0x561   :  { %2884 = vmatpush3.bf16.msra.mxu0 %v2883_v3 }
 0x562   :  { %2885 = vmatprep.subr.bf16.mxu0 %v4302_v52 }
 0x565   :  { %2887 = vmatpush3.bf16.msra.mxu0 %v2886_v8 }
 0x566   :  { %2888 = vmatprep.subr.bf16.mxu0 %v4302_v52 }
 0x569   :  { %2890 = vmatpush3.bf16.msra.mxu0 %v2889_v51 }
 0x56a   :  { %2891 = vmatprep.subr.bf16.mxu0 %v4302_v52 }
 0x56d   :  { %2893 = vmatpush3.bf16.msra.mxu0 %v2892_v45 }
 0x623   :  { %v2016_v29 = vpop.f32.mrb[4].mxu0 }
 0x624   :  { %v2017_v33 = vadd.f32 %v2016_v29, %v1949_v40  ;;  %v2604_v23 = vpop.f32.mrb[5].mxu0 }
 0x626   :  { %vm2020_vm9 = vcmp.gt.f32.partialorder %v2017_v33, 0.0  ;;  %v2021_v9 = vmul.f32 0.01, %v2017_v33 }
 0x628   :  { %v2022_v7 = vsel %vm2020_vm9, %v2017_v33, %v2021_v9 }
 0x629   :  { %v2023_v30 = vadd.f32 %v2022_v7, %v1928_v24 }
 0x62b   :  { %2638 = vmatmul.mubr.f32.vlgmr.msra.gmra.mrb[4].mxu1 %v2023_v30 }
 0x62c   :  { %2707 = vmatprep.mubr.msk.f32.mxu1 %vm3293_vm8, %v4301_v63  ;;  %2896 = vmatpush3.bf16.msra.mxu1 %v2895_v57  ;;  %v2218_v63 = vld [vmem:[#allocation10 + $0x20] sm:$0xff] }
 0x62d   :  { %2897 = vmatprep.subr.bf16.mxu1 %v4302_v52  ;;  %v2901_v2 = vpack.c.bf16 %v2219_v60, %v2218_v63 }
 0x630   :  { %2899 = vmatpush3.bf16.msra.mxu1 %v2898_v38 }
 0x631   :  { %2900 = vmatprep.subr.bf16.mxu1 %v4302_v52 }
 0x634   :  { %2902 = vmatpush3.bf16.msra.mxu1 %v2901_v2 }
 0x635   :  { %2903 = vmatprep.subr.bf16.mxu1 %v4302_v52 }
 0x638   :  { %2905 = vmatpush3.bf16.msra.mxu1 %v2904_v49 }
 0x639   :  { %2906 = vmatprep.subr.bf16.mxu1 %v4302_v52 }
 0x63c   :  { %2908 = vmatpush3.bf16.msra.mxu1 %v2907_v11 }
 0x63d   :  { %2909 = vmatprep.subr.bf16.mxu1 %v4302_v52 }
 0x640   :  { %2911 = vmatpush3.bf16.msra.mxu1 %v2910_v47 }
 0x641   :  { %2912 = vmatprep.subr.bf16.mxu1 %v4302_v52 }
 0x644   :  { %2914 = vmatpush3.bf16.msra.mxu1 %v2913_v59 }
 0x645   :  { %2915 = vmatprep.subr.bf16.mxu1 %v4302_v52 }
 0x648   :  { %2917 = vmatpush3.bf16.msra.mxu1 %v2916_v48 }
 0x6fe   :  { %v2111_v5 = vpop.f32.mrb[4].mxu1 }
 0x6ff   :  { %v2112_v55 = vadd.f32 %v2111_v5, %v2044_v42  ;;  %v2639_v41 = vpop.f32.mrb[5].mxu1 }
 0x701   :  { %vm2115_vm10 = vcmp.gt.f32.partialorder %v2112_v55, 0.0  ;;  %v2116_v24 = vmul.f32 0.01, %v2112_v55 }
 0x703   :  { %v2117_v25 = vsel %vm2115_vm10, %v2112_v55, %v2116_v24 }
 0x704   :  { %v2118_v53 = vadd.f32 %v2117_v25, %v2023_v30 }
 0x706   :  { %2673 = vmatmul.mubr.f32.vlgmr.msra.gmra.mrb[6].mxu0 %v2118_v53 }
 0x7d9   :  { %v2206_v16 = vpop.f32.mrb[6].mxu0 }
 0x7da   :  { %v2207_v36 = vadd.f32 %v2206_v16, %v2139_v54  ;;  %v2674_v10 = vpop.f32.mrb[7].mxu0 }
 0x7dc   :  { %vm2210_vm11 = vcmp.gt.f32.partialorder %v2207_v36, 0.0  ;;  %v2211_v58 = vmul.f32 0.01, %v2207_v36 }
 0x7de   :  { %v2212_v27 = vsel %vm2210_vm11, %v2207_v36, %v2211_v58 }
 0x7df   :  { %v2213_v50 = vadd.f32 %v2212_v27, %v2118_v53 }
 0x7e1   :  { %2708 = vmatmul.mubr.f32.vlgmr.msra.gmra.mrb[6].mxu1 %v2213_v50 }
 0x8b4   :  { %v2303_v52 = vpop.f32.mrb[6].mxu1 }
 0x8b5   :  { %v2304_v12 = vadd.f32 %v2327_v31, %v2303_v52  ;;  %v2709_v37 = vpop.f32.mrb[7].mxu1 }
 0x8b7   :  { %2307 = vst [vmem:[#allocation11] sm:$0xff] %v2304_v12 }
 0x8b8   :  { %3263 = shalt.err (!%p3260_p2)
}
 0x8b9   :  { %s3264_s15 = scalar_lea.hbm %s4222_s9, 128 }
 0x8ba   :  { %p3265_p3 = scmp.ne.s32.totalorder %s4222_s9, %s3264_s15  ;;  %p3268_p4 = scmp.lt.u32.totalorder %s3264_s15, %s4222_s9 }
 0x8bc   :  { %p3270_p5 = pnand %p3268_p4, %p3265_p3 }
 0x8be   :  { %3273 = shalt.err (!%p3270_p5)
}
 0x8bf   :  { %2317 = dma.vmem_to_hbm [thread:$0]  %s2315_s11, 128, %s4222_s9, [#allocation4]  }
 0x8c0   :  { %3280 = dma.done.wait [#allocation4], 128  }
 0x8c1   :  { %3281 = vsyncadd [#allocation4], 4294967168 }
 0x8c2   :  { %2321 = vsyncpa [#allocation3], 1 }
 0x8c3   :  { %2322 = vsyncpa [#allocation6], 1 }
 0x8c4   :  { %2323 = vsyncpa [#allocation9], 1 }
 0x8c5   :  { %2324 = vsyncpa [#allocation4], 1 }

</bundles_post_ra>
